<compile_context>
chip_gen: v6e
topology: v6e:2x2x1
jax: 0.10.0
libtpu: 0.0.40
codegen_flags: <defaults>
</compile_context>

<pallas_src>
import math
import functools

import jax
import jax.numpy as jnp
import numpy as np
from jax.experimental import pallas as pl
from jax.experimental.pallas import tpu as pltpu


# ----------------------------- configuration ------------------------------
B = 2            # batch
S = 8            # question length (seq)
DIM_WORD = 16
DIM_HIDDEN = 32  # H (BiGRU output dim; each direction is H//2)
NUM_WORDS = 40
NUM_ENTITIES = 24
NUM_RELATIONS = 6
NUM_TRIPLES = 48
NUM_STEPS = 3

LANE = 128
SUBLANE = 8


def _ceil_to(x, m):
    return ((x + m - 1) // m) * m


# ------------------------- in-kernel helper math ---------------------------
def _softmax_lastdim(x):
    x = x - jnp.max(x, axis=-1, keepdims=True)
    e = jnp.exp(x)
    s = jnp.sum(e, axis=-1, keepdims=True)
    # EUP approximate reciprocal + one Newton step -> f32-accurate rows summing to 1.
    r = pl.reciprocal(s, approx=True)
    r = r * (2.0 - s * r)
    return e * r


def _argmax_lastdim_keepdims(x):
    """First-occurrence argmax along the last axis, keepdims, int32."""
    n = x.shape[-1]
    idx = jax.lax.broadcasted_iota(jnp.int32, x.shape, x.ndim - 1)
    maxv = jnp.max(x, axis=-1, keepdims=True)
    cand = jnp.where(x >= maxv, idx, jnp.int32(n))
    return jnp.min(cand, axis=-1, keepdims=True)


# ------------------------------- the kernel --------------------------------
def _transfernet_kernel(num_steps, hid, seq_len, num_rel,
                        qwh_ref, qemb_ref, es_ref, wq_ref, bq_ref,
                        wr_ref, br_ref, msubjT_ref, mrelT_ref, mobj_ref,
                        e_score_ref, word_attns_ref, rel_probs_ref, ent_probs_ref):
    qwh = qwh_ref[...]                               # [Bp, Sp, Hp]  (zero padded, Sp small)
    qemb = qemb_ref[...]                             # [Bp, Hp]
    e_s = es_ref[...]                                # [Bp, Ep]
    # One-hot KG matrices are stored bf16 (exact 0/1); cast once -> exact f32 matmuls.
    msubjT = msubjT_ref[...].astype(jnp.float32)     # [Ep, Tp]
    mrelT = mrelT_ref[...].astype(jnp.float32)       # [Rp, Tp]
    mobj = mobj_ref[...].astype(jnp.float32)         # [Tp, Ep]

    Bp, Sp, Hp = qwh.shape
    Rp = mrelT.shape[0]
    NEG = jnp.float32(-1e30)

    # ONE MXU push for all step encoders + the hop selector, packed into a single
    # 128-lane tile: columns [t*hid : (t+1)*hid] = step t, columns
    # [num_steps*hid : num_steps*hid+num_steps] = hop selector.
    fused = jnp.dot(qemb, wq_ref[...], preferred_element_type=jnp.float32) + bq_ref[...]

    # Masks for zero-padded lane regions (logits -> -inf so softmax/argmax ignore them).
    seq_mask = jax.lax.broadcasted_iota(jnp.int32, (Bp, Sp), 1) < seq_len
    rel_mask = jax.lax.broadcasted_iota(jnp.int32, (Bp, Rp), 1) < num_rel
    hop_mask = jax.lax.broadcasted_iota(jnp.int32, (Bp, LANE), 1) < num_steps

    last_e = e_s
    rel_list = []
    ent_list = []

    for t in range(num_steps):                        # static unroll over reasoning hops
        # Realign step t's hid-wide slice of `fused` to lanes 0..hid-1 (XLU roll).
        shift = (-hid * t) % LANE
        fused_t = pltpu.roll(fused, shift=shift, axis=1) if shift else fused
        cq_t = jnp.tanh(fused_t)                      # lanes >= hid are junk * 0 below

        # word attention over the question (Sp is sublane-padded only)
        q_logits = jnp.sum(cq_t[:, None, :] * qwh, axis=2)            # [Bp, Sp]
        q_dist = _softmax_lastdim(jnp.where(seq_mask, q_logits, NEG))
        word_attns_ref[t] = q_dist                    # tiny masked store (Sp < 128), OK

        # attended context
        ctx_h = jnp.sum(q_dist[:, :, None] * qwh, axis=1)             # [Bp, Hp]

        # relation distribution
        rel_logit = jnp.dot(ctx_h, wr_ref[...],
                            preferred_element_type=jnp.float32) + br_ref[...]   # [Bp, Rp]
        rel_dist = _softmax_lastdim(jnp.where(rel_mask, rel_logit, NEG))
        rel_probs_ref[t] = rel_dist                   # full 128-lane tile store
        rel_list.append(rel_dist)

        # follow(e, r) == ((e @ Msubj^T) * (r @ Mrel^T)) @ Mobj  (dense stand-in for the
        # three torch.sparse.mm calls; all operands are full 128-tiles on the MXU)
        x1 = jnp.dot(last_e, msubjT, preferred_element_type=jnp.float32)     # [Bp, Tp]
        x2 = jnp.dot(rel_dist, mrelT, preferred_element_type=jnp.float32)    # [Bp, Tp]
        last_e = jnp.dot(x1 * x2, mobj, preferred_element_type=jnp.float32)  # [Bp, Ep]

        # clamp-by-division (x>1 -> 1) == min(x, 1) because last_e >= 0 here (invariant).
        last_e = jnp.minimum(last_e, 1.0)

        if t > 0:
            prev_rel = _argmax_lastdim_keepdims(rel_list[t - 1])      # [Bp, 1] int32
            curr_rel = _argmax_lastdim_keepdims(rel_list[t])          # [Bp, 1] int32
            prev_prev_ent = e_s if t == 1 else ent_list[t - 2]        # [Bp, Ep]
            cond = jnp.logical_and(
                jnp.abs(prev_rel - curr_rel) == 1,
                jnp.bitwise_and(jnp.minimum(prev_rel, curr_rel), 1) == 0)
            ent_m = cond.astype(jnp.float32) * (prev_prev_ent > 0.9).astype(jnp.float32)
            last_e = (1.0 - ent_m) * last_e

        ent_probs_ref[t] = last_e                     # full 128-lane tile store
        ent_list.append(last_e)

    # hop selection: roll hop-selector logits (cols num_steps*hid ..) into lanes 0..n-1
    hop_shift = (-hid * num_steps) % LANE
    hop_slab = pltpu.roll(fused, shift=hop_shift, axis=1) if hop_shift else fused
    hop_attn = _softmax_lastdim(jnp.where(hop_mask, hop_slab, NEG))   # [Bp, 128]

    out = ent_list[0] * hop_attn[:, 0:1]
    for t in range(1, num_steps):
        out = out + ent_list[t] * hop_attn[:, t:t + 1]

    hop_arg = _argmax_lastdim_keepdims(hop_attn)                      # [Bp, 1]
    m = (hop_arg == 1).astype(jnp.float32) * e_s                      # [Bp, Ep]
    e_score_ref[...] = (1.0 - m) * out                                # single full-tile store


# ---------------- one-time (out-of-jit) weight padding / packing -------------
def prepare_padded_params(p, num_steps=NUM_STEPS):
    """Pads / packs all loop-invariant weights ONCE (hoisted out of the per-call path)."""
    hid, n_rel = p["wr"].shape
    n_ent, n_tri = p["msubjT"].shape
    Hp = _ceil_to(hid, LANE)
    Rp = _ceil_to(n_rel, LANE)
    Ep = _ceil_to(n_ent, LANE)
    Tp = _ceil_to(n_tri, LANE)
    assert num_steps * hid + num_steps <= LANE, \
        "fused step/hop projection must fit in a single 128-lane tile"
    assert Hp == LANE, "hidden dim must pad to exactly one lane tile for the roll trick"

    f32 = jnp.float32
    # Single 128-lane packed projection: step encoders then hop selector.
    wq = jnp.zeros((Hp, LANE), f32)
    bq = jnp.zeros((1, LANE), f32)
    for t in range(num_steps):
        wq = wq.at[:hid, t * hid:(t + 1) * hid].set(p["step_w"][t])
        bq = bq.at[:, t * hid:(t + 1) * hid].set(p["step_b"][t])
    wq = wq.at[:hid, num_steps * hid:num_steps * hid + num_steps].set(p["wh"])
    bq = bq.at[:, num_steps * hid:num_steps * hid + num_steps].set(p["bh"])

    wr_p = jnp.zeros((Hp, Rp), f32).at[:hid, :n_rel].set(p["wr"])
    br_p = jnp.zeros((1, Rp), f32).at[:, :n_rel].set(p["br"])

    bf16 = jnp.bfloat16   # one-hot 0/1 values exactly representable -> halves KG DMA
    msubjT = jnp.zeros((Ep, Tp), bf16).at[:n_ent, :n_tri].set(p["msubjT"].astype(bf16))
    mrelT = jnp.zeros((Rp, Tp), bf16).at[:n_rel, :n_tri].set(p["mrelT"].astype(bf16))
    mobj = jnp.zeros((Tp, Ep), bf16).at[:n_tri, :n_ent].set(p["mobj"].astype(bf16))

    return {"wq": wq, "bq": bq, "wr": wr_p, "br": br_p,
            "msubjT": msubjT, "mrelT": mrelT, "mobj": mobj}


def reasoning_pallas(q_word_h, q_emb, e_s, n_rel, pp, num_steps=NUM_STEPS):
    """Runs the multi-step reasoning loop + hop selection inside one Pallas kernel.

    Only the activations (qwh / qemb / e_s) are padded per call; all weights arrive
    pre-padded from prepare_padded_params().  Padded output columns are exact zeros
    and are sliced off here.
    """
    bsz, seq, hid = q_word_h.shape
    n_ent = e_s.shape[1]

    Bp = _ceil_to(bsz, SUBLANE)
    Sp = _ceil_to(seq, SUBLANE)           # sequence is a SUBLANE axis -> 8-align only
    Hp = pp["wq"].shape[0]
    Rp = pp["wr"].shape[1]
    Ep = pp["msubjT"].shape[0]
    Tp = pp["msubjT"].shape[1]

    f32 = jnp.float32

    # -------- pad activations (per-call, tiny) --------
    qwh_p = jnp.zeros((Bp, Sp, Hp), f32).at[:bsz, :seq, :hid].set(q_word_h)
    qemb_p = jnp.zeros((Bp, Hp), f32).at[:bsz, :hid].set(q_emb)
    es_p = jnp.zeros((Bp, Ep), f32).at[:bsz, :n_ent].set(e_s)

    kernel = functools.partial(_transfernet_kernel, num_steps, hid, seq, n_rel)
    vmem = pl.BlockSpec(memory_space=pltpu.MemorySpace.VMEM)

    out_shapes = (
        jax.ShapeDtypeStruct((Bp, Ep), f32),                 # e_score
        jax.ShapeDtypeStruct((num_steps, Bp, Sp), f32),      # word_attns
        jax.ShapeDtypeStruct((num_steps, Bp, Rp), f32),      # rel_probs
        jax.ShapeDtypeStruct((num_steps, Bp, Ep), f32),      # ent_probs
    )

    # Advisory cost estimate so XLA schedules the BiGRU / padding ops around this call.
    flops = 2 * Bp * Hp * LANE + num_steps * (
        2 * Bp * Sp * Hp          # word-attention logits
        + 2 * Bp * Sp * Hp        # attended context
        + 2 * Bp * Hp * Rp        # rel classifier
        + 2 * Bp * Ep * Tp        # e @ Msubj^T
        + 2 * Bp * Rp * Tp        # r @ Mrel^T
        + 2 * Bp * Tp * Ep)       # (x1*x2) @ Mobj
    transcend = Bp * LANE + num_steps * (Bp * LANE + Bp * Sp + Bp * Rp)
    bytes_accessed = (
        (qwh_p.size + qemb_p.size + es_p.size) * 4
        + (pp["wq"].size + pp["bq"].size + pp["wr"].size + pp["br"].size) * 4
        + (pp["msubjT"].size + pp["mrelT"].size + pp["mobj"].size) * 2
        + (Bp * Ep + num_steps * (Bp * Sp + Bp * Rp + Bp * Ep)) * 4)
    cost = pl.CostEstimate(flops=int(flops), transcendentals=int(transcend),
                           bytes_accessed=int(bytes_accessed))

    e_score, wa, rp, ep = pl.pallas_call(
        kernel,
        out_shape=out_shapes,
        in_specs=[vmem] * 10,
        out_specs=(vmem, vmem, vmem, vmem),
        cost_estimate=cost,
    )(qwh_p, qemb_p, es_p, pp["wq"], pp["bq"], pp["wr"], pp["br"],
      pp["msubjT"], pp["mrelT"], pp["mobj"])

    return (e_score[:bsz, :n_ent], wa[:, :bsz, :seq],
            rp[:, :bsz, :n_rel], ep[:, :bsz, :n_ent])


# ------------------------- BiGRU encoder (plain JAX glue) -------------------
def _gru_direction(x, lens, params, reverse):
    Wi, Wh, bi, bh = params
    bsz, seq, _ = x.shape
    hd = Wh.shape[1]
    xs = jnp.transpose(x, (1, 0, 2))          # [S, B, D]
    ts = jnp.arange(seq)

    def step(h, inp):
        x_t, t = inp
        gi = x_t @ Wi.T + bi
        gh = h @ Wh.T + bh
        i_r, i_z, i_n = jnp.split(gi, 3, axis=-1)
        h_r, h_z, h_n = jnp.split(gh, 3, axis=-1)
        r = jax.nn.sigmoid(i_r + h_r)
        z = jax.nn.sigmoid(i_z + h_z)
        n = jnp.tanh(i_n + r * h_n)
        h_new = (1.0 - z) * n + z * h
        mask = (t < lens).astype(jnp.float32)[:, None]
        h = mask * h_new + (1.0 - mask) * h
        return h, mask * h                    # padded positions -> 0 (packed-seq semantics)

    h0 = jnp.zeros((bsz, hd), jnp.float32)
    h_final, outs = jax.lax.scan(step, h0, (xs, ts), reverse=reverse)
    return jnp.transpose(outs, (1, 0, 2)), h_final


def bigru_encode(x, lens, fwd_params, bwd_params):
    out_f, h_f = _gru_direction(x, lens, fwd_params, reverse=False)
    out_b, h_b = _gru_direction(x, lens, bwd_params, reverse=True)
    q_word_h = jnp.concatenate([out_f, out_b], axis=-1)      # [B, S, H]
    q_emb = jnp.concatenate([h_f, h_b], axis=-1)             # [B, H]
    return q_word_h, q_emb


# --------------------------- full forward wrapper ---------------------------
def transfernet_forward(questions, e_s, params, padded_params):
    lens = questions.shape[1] - jnp.sum((questions == 0).astype(jnp.int32), axis=1)
    q_word_emb = params["word_emb"][questions]                # Dropout == identity (eval)
    q_word_h, q_emb = bigru_encode(q_word_emb, lens,
                                   params["gru_fwd"], params["gru_bwd"])
    n_rel = params["wr"].shape[1]
    e_score, word_attns, rel_probs, ent_probs = reasoning_pallas(
        q_word_h, q_emb, e_s, n_rel, padded_params, NUM_STEPS)
    return {"e_score": e_score, "word_attns": word_attns,
            "rel_probs": rel_probs, "ent_probs": ent_probs,
            "q_word_h": q_word_h, "q_embeddings": q_emb}


# ----------------------- pure-JAX reference (for checking) ------------------
def reference_reasoning(q_word_h, q_emb, e_s, p, num_steps=NUM_STEPS):
    last_e = e_s
    rel_list, ent_list = [], []
    for t in range(num_steps):
        cq = jnp.tanh(q_emb @ p["step_w"][t] + p["step_b"][t])
        q_logits = jnp.sum(cq[:, None, :] * q_word_h, axis=2)
        q_dist = jax.nn.softmax(q_logits, axis=1)
        ctx_h = jnp.sum(q_dist[:, :, None] * q_word_h, axis=1)
        rel_dist = jax.nn.softmax(ctx_h @ p["wr"] + p["br"], axis=1)
        rel_list.append(rel_dist)
        x = (last_e @ p["msubjT"]) * (rel_dist @ p["mrelT"])
        last_e = x @ p["mobj"]
        z = jnp.where(last_e > 1.0, last_e, 1.0)
        last_e = last_e / z
        if t > 0:
            prev_rel = jnp.argmax(rel_list[t - 1], axis=1)
            curr_rel = jnp.argmax(rel_list[t], axis=1)
            prev_prev = e_s if t == 1 else ent_list[t - 2]
            cond = (jnp.abs(prev_rel - curr_rel) == 1) & (jnp.minimum(prev_rel, curr_rel) % 2 == 0)
            m = cond.astype(jnp.float32)[:, None]
            ent_m = m * (prev_prev > 0.9).astype(jnp.float32)
            last_e = (1.0 - ent_m) * last_e
        ent_list.append(last_e)
    hop_res = jnp.stack(ent_list, axis=1)
    hop_attn = jax.nn.softmax(q_emb @ p["wh"] + p["bh"], axis=1)
    last_e = jnp.sum(hop_res * hop_attn[:, :, None], axis=1)
    m = (jnp.argmax(hop_attn, axis=1) == 1).astype(jnp.float32)[:, None] * e_s
    return (1.0 - m) * last_e


# ------------------------------- param setup --------------------------------
def _uniform(key, shape, scale):
    return jax.random.uniform(key, shape, jnp.float32, minval=-scale, maxval=scale)


def make_params(key):
    ks = jax.random.split(key, 24)
    hd = DIM_HIDDEN // 2
    sH = 1.0 / math.sqrt(DIM_HIDDEN)
    shd = 1.0 / math.sqrt(hd)

    params = {
        "word_emb": jax.random.normal(ks[0], (NUM_WORDS, DIM_WORD), jnp.float32),
        "gru_fwd": (_uniform(ks[1], (3 * hd, DIM_WORD), shd),
                    _uniform(ks[2], (3 * hd, hd), shd),
                    _uniform(ks[3], (3 * hd,), shd),
                    _uniform(ks[4], (3 * hd,), shd)),
        "gru_bwd": (_uniform(ks[5], (3 * hd, DIM_WORD), shd),
                    _uniform(ks[6], (3 * hd, hd), shd),
                    _uniform(ks[7], (3 * hd,), shd),
                    _uniform(ks[8], (3 * hd,), shd)),
        "step_w": _uniform(ks[9], (NUM_STEPS, DIM_HIDDEN, DIM_HIDDEN), sH),
        "step_b": _uniform(ks[10], (NUM_STEPS, 1, DIM_HIDDEN), sH),
        "wr": _uniform(ks[11], (DIM_HIDDEN, NUM_RELATIONS), sH),
        "br": _uniform(ks[12], (1, NUM_RELATIONS), sH),
        "wh": _uniform(ks[13], (DIM_HIDDEN, NUM_STEPS), sH),
        "bh": _uniform(ks[14], (1, NUM_STEPS), sH),
    }

    # synthetic knowledge graph: NUM_TRIPLES random (subject, relation, object)
    subj = jax.random.randint(ks[15], (NUM_TRIPLES,), 0, NUM_ENTITIES)
    rel = jax.random.randint(ks[16], (NUM_TRIPLES,), 0, NUM_RELATIONS)
    obj = jax.random.randint(ks[17], (NUM_TRIPLES,), 0, NUM_ENTITIES)
    msubj = jax.nn.one_hot(subj, NUM_ENTITIES, dtype=jnp.float32)   # [T, E]
    mrel = jax.nn.one_hot(rel, NUM_RELATIONS, dtype=jnp.float32)    # [T, R]
    mobj = jax.nn.one_hot(obj, NUM_ENTITIES, dtype=jnp.float32)     # [T, E]
    params["msubjT"] = msubj.T                                      # [E, T]
    params["mrelT"] = mrel.T                                        # [R, T]
    params["mobj"] = mobj                                           # [T, E]
    return params, ks[18], ks[19]


# ----------------------------------- main ------------------------------------
if __name__ == "__main__":
    key = jax.random.PRNGKey(0)
    params, kq, ke = make_params(key)
    padded_params = prepare_padded_params(params, NUM_STEPS)   # one-time, out of jit

    # questions: int token ids; include some padding (id 0) in the second sample
    questions = jax.random.randint(kq, (B, S), 1, NUM_WORDS)
    questions = questions.at[1, S - 2:].set(0)

    # starting entity distribution: one-hot topic entities
    start_ent = jax.random.randint(ke, (B,), 0, NUM_ENTITIES)
    e_s = jax.nn.one_hot(start_ent, NUM_ENTITIES, dtype=jnp.float32)

    out = jax.jit(transfernet_forward)(questions, e_s, params, padded_params)
    e_score = jax.block_until_ready(out["e_score"])

    # sanity check against a pure-JAX reference of the reasoning path
    ref = reference_reasoning(np.asarray(out["q_word_h"]),
                              np.asarray(out["q_embeddings"]),
                              np.asarray(e_s), params, NUM_STEPS)
    ref = np.asarray(jax.block_until_ready(ref))
    assert e_score.shape == (B, NUM_ENTITIES)
    assert out["word_attns"].shape == (NUM_STEPS, B, S)
    assert out["rel_probs"].shape == (NUM_STEPS, B, NUM_RELATIONS)
    assert out["ent_probs"].shape == (NUM_STEPS, B, NUM_ENTITIES)
    assert np.allclose(np.asarray(e_score), ref, rtol=5e-2, atol=5e-2), \
        f"max abs diff {np.max(np.abs(np.asarray(e_score) - ref))}"

    print("KERNEL_OK")
</pallas_src>

<mosaic_0001>
module attributes {stable_mosaic.version = 11 : i64} {
  func.func @_transfernet_kernel(%arg0: memref<8x8x128xf32, #tpu.memory_space<vmem>>, %arg1: memref<8x128xf32, #tpu.memory_space<vmem>>, %arg2: memref<8x128xf32, #tpu.memory_space<vmem>>, %arg3: memref<128x128xf32, #tpu.memory_space<vmem>>, %arg4: memref<1x128xf32, #tpu.memory_space<vmem>>, %arg5: memref<128x128xf32, #tpu.memory_space<vmem>>, %arg6: memref<1x128xf32, #tpu.memory_space<vmem>>, %arg7: memref<128x128xbf16, #tpu.memory_space<vmem>>, %arg8: memref<128x128xbf16, #tpu.memory_space<vmem>>, %arg9: memref<128x128xbf16, #tpu.memory_space<vmem>>, %arg10: memref<8x128xf32, #tpu.memory_space<vmem>>, %arg11: memref<3x8x8xf32, #tpu.memory_space<vmem>>, %arg12: memref<3x8x128xf32, #tpu.memory_space<vmem>>, %arg13: memref<3x8x128xf32, #tpu.memory_space<vmem>>) attributes {dimension_semantics = [], scalar_prefetch = 0 : i64, scratch_operands = 0 : i64, tpu.core_type = #tpu.core_type<tc>} {
    %c0 = arith.constant 0 : index
    %c0_0 = arith.constant 0 : index
    %c0_1 = arith.constant 0 : index
    %0 = vector.load %arg0[%c0, %c0_0, %c0_1] : memref<8x8x128xf32, #tpu.memory_space<vmem>>, vector<8x8x128xf32>
    %c0_2 = arith.constant 0 : index
    %c0_3 = arith.constant 0 : index
    %1 = vector.load %arg1[%c0_2, %c0_3] : memref<8x128xf32, #tpu.memory_space<vmem>>, vector<8x128xf32>
    %c0_4 = arith.constant 0 : index
    %c0_5 = arith.constant 0 : index
    %2 = vector.load %arg2[%c0_4, %c0_5] : memref<8x128xf32, #tpu.memory_space<vmem>>, vector<8x128xf32>
    %c0_6 = arith.constant 0 : index
    %c0_7 = arith.constant 0 : index
    %3 = vector.load %arg7[%c0_6, %c0_7] : memref<128x128xbf16, #tpu.memory_space<vmem>>, vector<128x128xbf16>
    %4 = arith.extf %3 : vector<128x128xbf16> to vector<128x128xf32>
    %c0_8 = arith.constant 0 : index
    %c0_9 = arith.constant 0 : index
    %5 = vector.load %arg8[%c0_8, %c0_9] : memref<128x128xbf16, #tpu.memory_space<vmem>>, vector<128x128xbf16>
    %6 = arith.extf %5 : vector<128x128xbf16> to vector<128x128xf32>
    %c0_10 = arith.constant 0 : index
    %c0_11 = arith.constant 0 : index
    %7 = vector.load %arg9[%c0_10, %c0_11] : memref<128x128xbf16, #tpu.memory_space<vmem>>, vector<128x128xbf16>
    %8 = arith.extf %7 : vector<128x128xbf16> to vector<128x128xf32>
    %c0_12 = arith.constant 0 : index
    %c0_13 = arith.constant 0 : index
    %9 = vector.load %arg3[%c0_12, %c0_13] : memref<128x128xf32, #tpu.memory_space<vmem>>, vector<128x128xf32>
    %cst = arith.constant dense<0.000000e+00> : vector<8x128xf32>
    %10 = tpu.matmul %1, %9, %cst {dimension_numbers = #tpu.dot_dimension_numbers<[1], [0], [0], [1], [0, 0, 1, 1], [], []>} : vector<8x128xf32>, vector<128x128xf32>, vector<8x128xf32> -> vector<8x128xf32>
    %c0_14 = arith.constant 0 : index
    %c0_15 = arith.constant 0 : index
    %11 = vector.load %arg4[%c0_14, %c0_15] : memref<1x128xf32, #tpu.memory_space<vmem>>, vector<1x128xf32>
    %12 = vector.broadcast %11 : vector<1x128xf32> to vector<8x128xf32>
    %13 = arith.addf %10, %12 : vector<8x128xf32>
    %14 = tpu.iota {dimensions = array<i32: 1>} : vector<8x8xi32>
    %c8_i32 = arith.constant 8 : i32
    %15 = vector.broadcast %c8_i32 : i32 to vector<8x8xi32>
    %16 = arith.cmpi slt, %14, %15 : vector<8x8xi32>
    %17 = tpu.iota {dimensions = array<i32: 1>} : vector<8x128xi32>
    %c6_i32 = arith.constant 6 : i32
    %18 = vector.broadcast %c6_i32 : i32 to vector<8x128xi32>
    %19 = arith.cmpi slt, %17, %18 : vector<8x128xi32>
    %20 = tpu.iota {dimensions = array<i32: 1>} : vector<8x128xi32>
    %c3_i32 = arith.constant 3 : i32
    %21 = vector.broadcast %c3_i32 : i32 to vector<8x128xi32>
    %22 = arith.cmpi slt, %20, %21 : vector<8x128xi32>
    %23 = math.tanh %13 : vector<8x128xf32>
    %24 = vector.shape_cast %23 : vector<8x128xf32> to vector<8x1x128xf32>
    %25 = vector.broadcast %24 : vector<8x1x128xf32> to vector<8x8x128xf32>
    %26 = arith.mulf %25, %0 : vector<8x8x128xf32>
    %cst_16 = arith.constant dense<0.000000e+00> : vector<8x8xf32>
    %27 = vector.multi_reduction <add>, %26, %cst_16 [2] : vector<8x8x128xf32> to vector<8x8xf32>
    %cst_17 = arith.constant -1.000000e+30 : f32
    %28 = vector.broadcast %cst_17 : f32 to vector<8x8xf32>
    %29 = arith.select %16, %27, %28 : vector<8x8xi1>, vector<8x8xf32>
    %cst_18 = arith.constant dense<0xFF800000> : vector<8xf32>
    %30 = vector.multi_reduction <maximumf>, %29, %cst_18 [1] : vector<8x8xf32> to vector<8xf32>
    %31 = vector.shape_cast %30 : vector<8xf32> to vector<8x1xf32>
    %32 = vector.broadcast %31 : vector<8x1xf32> to vector<8x8xf32>
    %33 = arith.subf %29, %32 : vector<8x8xf32>
    %34 = math.exp %33 : vector<8x8xf32>
    %cst_19 = arith.constant dense<0.000000e+00> : vector<8xf32>
    %35 = vector.multi_reduction <add>, %34, %cst_19 [1] : vector<8x8xf32> to vector<8xf32>
    %36 = vector.shape_cast %35 : vector<8xf32> to vector<8x1xf32>
    %37 = tpu.reciprocal %36 {approx = true} : vector<8x1xf32> -> vector<8x1xf32>
    %38 = arith.mulf %36, %37 : vector<8x1xf32>
    %cst_20 = arith.constant 2.000000e+00 : f32
    %39 = vector.broadcast %cst_20 : f32 to vector<8x1xf32>
    %40 = arith.subf %39, %38 : vector<8x1xf32>
    %41 = arith.mulf %37, %40 : vector<8x1xf32>
    %42 = vector.broadcast %41 : vector<8x1xf32> to vector<8x8xf32>
    %43 = arith.mulf %34, %42 : vector<8x8xf32>
    %c0_21 = arith.constant 0 : index
    %c0_22 = arith.constant 0 : index
    %c0_23 = arith.constant 0 : index
    %44 = vector.load %arg11[%c0_21, %c0_22, %c0_23] : memref<3x8x8xf32, #tpu.memory_space<vmem>>, vector<1x8x8xf32>
    %45 = vector.shape_cast %44 : vector<1x8x8xf32> to vector<8x8xf32>
    %46 = vector.shape_cast %43 : vector<8x8xf32> to vector<1x8x8xf32>
    tpu.vector_store %arg11[%c0_21, %c0_22, %c0_23], %46 {strides = array<i32>} : memref<3x8x8xf32, #tpu.memory_space<vmem>>, vector<1x8x8xf32>,
    %47 = vector.shape_cast %43 : vector<8x8xf32> to vector<8x8x1xf32>
    %48 = vector.broadcast %47 : vector<8x8x1xf32> to vector<8x8x128xf32>
    %49 = arith.mulf %48, %0 : vector<8x8x128xf32>
    %cst_24 = arith.constant dense<0.000000e+00> : vector<8x128xf32>
    %50 = vector.multi_reduction <add>, %49, %cst_24 [1] : vector<8x8x128xf32> to vector<8x128xf32>
    %c0_25 = arith.constant 0 : index
    %c0_26 = arith.constant 0 : index
    %51 = vector.load %arg5[%c0_25, %c0_26] : memref<128x128xf32, #tpu.memory_space<vmem>>, vector<128x128xf32>
    %cst_27 = arith.constant dense<0.000000e+00> : vector<8x128xf32>
    %52 = tpu.matmul %50, %51, %cst_27 {dimension_numbers = #tpu.dot_dimension_numbers<[1], [0], [0], [1], [0, 0, 1, 1], [], []>} : vector<8x128xf32>, vector<128x128xf32>, vector<8x128xf32> -> vector<8x128xf32>
    %c0_28 = arith.constant 0 : index
    %c0_29 = arith.constant 0 : index
    %53 = vector.load %arg6[%c0_28, %c0_29] : memref<1x128xf32, #tpu.memory_space<vmem>>, vector<1x128xf32>
    %54 = vector.broadcast %53 : vector<1x128xf32> to vector<8x128xf32>
    %55 = arith.addf %52, %54 : vector<8x128xf32>
    %cst_30 = arith.constant -1.000000e+30 : f32
    %56 = vector.broadcast %cst_30 : f32 to vector<8x128xf32>
    %57 = arith.select %19, %55, %56 : vector<8x128xi1>, vector<8x128xf32>
    %cst_31 = arith.constant dense<0xFF800000> : vector<8xf32>
    %58 = vector.multi_reduction <maximumf>, %57, %cst_31 [1] : vector<8x128xf32> to vector<8xf32>
    %59 = vector.shape_cast %58 : vector<8xf32> to vector<8x1xf32>
    %60 = vector.broadcast %59 : vector<8x1xf32> to vector<8x128xf32>
    %61 = arith.subf %57, %60 : vector<8x128xf32>
    %62 = math.exp %61 : vector<8x128xf32>
    %cst_32 = arith.constant dense<0.000000e+00> : vector<8xf32>
    %63 = vector.multi_reduction <add>, %62, %cst_32 [1] : vector<8x128xf32> to vector<8xf32>
    %64 = vector.shape_cast %63 : vector<8xf32> to vector<8x1xf32>
    %65 = tpu.reciprocal %64 {approx = true} : vector<8x1xf32> -> vector<8x1xf32>
    %66 = arith.mulf %64, %65 : vector<8x1xf32>
    %cst_33 = arith.constant 2.000000e+00 : f32
    %67 = vector.broadcast %cst_33 : f32 to vector<8x1xf32>
    %68 = arith.subf %67, %66 : vector<8x1xf32>
    %69 = arith.mulf %65, %68 : vector<8x1xf32>
    %70 = vector.broadcast %69 : vector<8x1xf32> to vector<8x128xf32>
    %71 = arith.mulf %62, %70 : vector<8x128xf32>
    %c0_34 = arith.constant 0 : index
    %c0_35 = arith.constant 0 : index
    %c0_36 = arith.constant 0 : index
    %72 = vector.load %arg12[%c0_34, %c0_35, %c0_36] : memref<3x8x128xf32, #tpu.memory_space<vmem>>, vector<1x8x128xf32>
    %73 = vector.shape_cast %72 : vector<1x8x128xf32> to vector<8x128xf32>
    %74 = vector.shape_cast %71 : vector<8x128xf32> to vector<1x8x128xf32>
    tpu.vector_store %arg12[%c0_34, %c0_35, %c0_36], %74 {strides = array<i32>} : memref<3x8x128xf32, #tpu.memory_space<vmem>>, vector<1x8x128xf32>,
    %cst_37 = arith.constant dense<0.000000e+00> : vector<8x128xf32>
    %75 = tpu.matmul %2, %4, %cst_37 {dimension_numbers = #tpu.dot_dimension_numbers<[1], [0], [0], [1], [0, 0, 1, 1], [], []>} : vector<8x128xf32>, vector<128x128xf32>, vector<8x128xf32> -> vector<8x128xf32>
    %cst_38 = arith.constant dense<0.000000e+00> : vector<8x128xf32>
    %76 = tpu.matmul %71, %6, %cst_38 {dimension_numbers = #tpu.dot_dimension_numbers<[1], [0], [0], [1], [0, 0, 1, 1], [], []>} : vector<8x128xf32>, vector<128x128xf32>, vector<8x128xf32> -> vector<8x128xf32>
    %77 = arith.mulf %75, %76 : vector<8x128xf32>
    %cst_39 = arith.constant dense<0.000000e+00> : vector<8x128xf32>
    %78 = tpu.matmul %77, %8, %cst_39 {dimension_numbers = #tpu.dot_dimension_numbers<[1], [0], [0], [1], [0, 0, 1, 1], [], []>} : vector<8x128xf32>, vector<128x128xf32>, vector<8x128xf32> -> vector<8x128xf32>
    %cst_40 = arith.constant 1.000000e+00 : f32
    %79 = vector.broadcast %cst_40 : f32 to vector<8x128xf32>
    %80 = arith.minimumf %78, %79 : vector<8x128xf32>
    %c0_41 = arith.constant 0 : index
    %c0_42 = arith.constant 0 : index
    %c0_43 = arith.constant 0 : index
    %81 = vector.load %arg13[%c0_41, %c0_42, %c0_43] : memref<3x8x128xf32, #tpu.memory_space<vmem>>, vector<1x8x128xf32>
    %82 = vector.shape_cast %81 : vector<1x8x128xf32> to vector<8x128xf32>
    %83 = vector.shape_cast %80 : vector<8x128xf32> to vector<1x8x128xf32>
    tpu.vector_store %arg13[%c0_41, %c0_42, %c0_43], %83 {strides = array<i32>} : memref<3x8x128xf32, #tpu.memory_space<vmem>>, vector<1x8x128xf32>,
    %c96_i32 = arith.constant 96 : i32
    %84 = tpu.dynamic_rotate %13 by %c96_i32 dim 1 : vector<8x128xf32>, i32 -> vector<8x128xf32>
    %85 = math.tanh %84 : vector<8x128xf32>
    %86 = vector.shape_cast %85 : vector<8x128xf32> to vector<8x1x128xf32>
    %87 = vector.broadcast %86 : vector<8x1x128xf32> to vector<8x8x128xf32>
    %88 = arith.mulf %87, %0 : vector<8x8x128xf32>
    %cst_44 = arith.constant dense<0.000000e+00> : vector<8x8xf32>
    %89 = vector.multi_reduction <add>, %88, %cst_44 [2] : vector<8x8x128xf32> to vector<8x8xf32>
    %cst_45 = arith.constant -1.000000e+30 : f32
    %90 = vector.broadcast %cst_45 : f32 to vector<8x8xf32>
    %91 = arith.select %16, %89, %90 : vector<8x8xi1>, vector<8x8xf32>
    %cst_46 = arith.constant dense<0xFF800000> : vector<8xf32>
    %92 = vector.multi_reduction <maximumf>, %91, %cst_46 [1] : vector<8x8xf32> to vector<8xf32>
    %93 = vector.shape_cast %92 : vector<8xf32> to vector<8x1xf32>
    %94 = vector.broadcast %93 : vector<8x1xf32> to vector<8x8xf32>
    %95 = arith.subf %91, %94 : vector<8x8xf32>
    %96 = math.exp %95 : vector<8x8xf32>
    %cst_47 = arith.constant dense<0.000000e+00> : vector<8xf32>
    %97 = vector.multi_reduction <add>, %96, %cst_47 [1] : vector<8x8xf32> to vector<8xf32>
    %98 = vector.shape_cast %97 : vector<8xf32> to vector<8x1xf32>
    %99 = tpu.reciprocal %98 {approx = true} : vector<8x1xf32> -> vector<8x1xf32>
    %100 = arith.mulf %98, %99 : vector<8x1xf32>
    %cst_48 = arith.constant 2.000000e+00 : f32
    %101 = vector.broadcast %cst_48 : f32 to vector<8x1xf32>
    %102 = arith.subf %101, %100 : vector<8x1xf32>
    %103 = arith.mulf %99, %102 : vector<8x1xf32>
    %104 = vector.broadcast %103 : vector<8x1xf32> to vector<8x8xf32>
    %105 = arith.mulf %96, %104 : vector<8x8xf32>
    %c1 = arith.constant 1 : index
    %c0_49 = arith.constant 0 : index
    %c0_50 = arith.constant 0 : index
    %106 = vector.load %arg11[%c1, %c0_49, %c0_50] : memref<3x8x8xf32, #tpu.memory_space<vmem>>, vector<1x8x8xf32>
    %107 = vector.shape_cast %106 : vector<1x8x8xf32> to vector<8x8xf32>
    %108 = vector.shape_cast %105 : vector<8x8xf32> to vector<1x8x8xf32>
    tpu.vector_store %arg11[%c1, %c0_49, %c0_50], %108 {strides = array<i32>} : memref<3x8x8xf32, #tpu.memory_space<vmem>>, vector<1x8x8xf32>,
    %109 = vector.shape_cast %105 : vector<8x8xf32> to vector<8x8x1xf32>
    %110 = vector.broadcast %109 : vector<8x8x1xf32> to vector<8x8x128xf32>
    %111 = arith.mulf %110, %0 : vector<8x8x128xf32>
    %cst_51 = arith.constant dense<0.000000e+00> : vector<8x128xf32>
    %112 = vector.multi_reduction <add>, %111, %cst_51 [1] : vector<8x8x128xf32> to vector<8x128xf32>
    %c0_52 = arith.constant 0 : index
    %c0_53 = arith.constant 0 : index
    %113 = vector.load %arg5[%c0_52, %c0_53] : memref<128x128xf32, #tpu.memory_space<vmem>>, vector<128x128xf32>
    %cst_54 = arith.constant dense<0.000000e+00> : vector<8x128xf32>
    %114 = tpu.matmul %112, %113, %cst_54 {dimension_numbers = #tpu.dot_dimension_numbers<[1], [0], [0], [1], [0, 0, 1, 1], [], []>} : vector<8x128xf32>, vector<128x128xf32>, vector<8x128xf32> -> vector<8x128xf32>
    %c0_55 = arith.constant 0 : index
    %c0_56 = arith.constant 0 : index
    %115 = vector.load %arg6[%c0_55, %c0_56] : memref<1x128xf32, #tpu.memory_space<vmem>>, vector<1x128xf32>
    %116 = vector.broadcast %115 : vector<1x128xf32> to vector<8x128xf32>
    %117 = arith.addf %114, %116 : vector<8x128xf32>
    %cst_57 = arith.constant -1.000000e+30 : f32
    %118 = vector.broadcast %cst_57 : f32 to vector<8x128xf32>
    %119 = arith.select %19, %117, %118 : vector<8x128xi1>, vector<8x128xf32>
    %cst_58 = arith.constant dense<0xFF800000> : vector<8xf32>
    %120 = vector.multi_reduction <maximumf>, %119, %cst_58 [1] : vector<8x128xf32> to vector<8xf32>
    %121 = vector.shape_cast %120 : vector<8xf32> to vector<8x1xf32>
    %122 = vector.broadcast %121 : vector<8x1xf32> to vector<8x128xf32>
    %123 = arith.subf %119, %122 : vector<8x128xf32>
    %124 = math.exp %123 : vector<8x128xf32>
    %cst_59 = arith.constant dense<0.000000e+00> : vector<8xf32>
    %125 = vector.multi_reduction <add>, %124, %cst_59 [1] : vector<8x128xf32> to vector<8xf32>
    %126 = vector.shape_cast %125 : vector<8xf32> to vector<8x1xf32>
    %127 = tpu.reciprocal %126 {approx = true} : vector<8x1xf32> -> vector<8x1xf32>
    %128 = arith.mulf %126, %127 : vector<8x1xf32>
    %cst_60 = arith.constant 2.000000e+00 : f32
    %129 = vector.broadcast %cst_60 : f32 to vector<8x1xf32>
    %130 = arith.subf %129, %128 : vector<8x1xf32>
    %131 = arith.mulf %127, %130 : vector<8x1xf32>
    %132 = vector.broadcast %131 : vector<8x1xf32> to vector<8x128xf32>
    %133 = arith.mulf %124, %132 : vector<8x128xf32>
    %c1_61 = arith.constant 1 : index
    %c0_62 = arith.constant 0 : index
    %c0_63 = arith.constant 0 : index
    %134 = vector.load %arg12[%c1_61, %c0_62, %c0_63] : memref<3x8x128xf32, #tpu.memory_space<vmem>>, vector<1x8x128xf32>
    %135 = vector.shape_cast %134 : vector<1x8x128xf32> to vector<8x128xf32>
    %136 = vector.shape_cast %133 : vector<8x128xf32> to vector<1x8x128xf32>
    tpu.vector_store %arg12[%c1_61, %c0_62, %c0_63], %136 {strides = array<i32>} : memref<3x8x128xf32, #tpu.memory_space<vmem>>, vector<1x8x128xf32>,
    %cst_64 = arith.constant dense<0.000000e+00> : vector<8x128xf32>
    %137 = tpu.matmul %80, %4, %cst_64 {dimension_numbers = #tpu.dot_dimension_numbers<[1], [0], [0], [1], [0, 0, 1, 1], [], []>} : vector<8x128xf32>, vector<128x128xf32>, vector<8x128xf32> -> vector<8x128xf32>
    %cst_65 = arith.constant dense<0.000000e+00> : vector<8x128xf32>
    %138 = tpu.matmul %133, %6, %cst_65 {dimension_numbers = #tpu.dot_dimension_numbers<[1], [0], [0], [1], [0, 0, 1, 1], [], []>} : vector<8x128xf32>, vector<128x128xf32>, vector<8x128xf32> -> vector<8x128xf32>
    %139 = arith.mulf %137, %138 : vector<8x128xf32>
    %cst_66 = arith.constant dense<0.000000e+00> : vector<8x128xf32>
    %140 = tpu.matmul %139, %8, %cst_66 {dimension_numbers = #tpu.dot_dimension_numbers<[1], [0], [0], [1], [0, 0, 1, 1], [], []>} : vector<8x128xf32>, vector<128x128xf32>, vector<8x128xf32> -> vector<8x128xf32>
    %cst_67 = arith.constant 1.000000e+00 : f32
    %141 = vector.broadcast %cst_67 : f32 to vector<8x128xf32>
    %142 = arith.minimumf %140, %141 : vector<8x128xf32>
    %143 = tpu.iota {dimensions = array<i32: 1>} : vector<8x128xi32>
    %cst_68 = arith.constant dense<0xFF800000> : vector<8xf32>
    %144 = vector.multi_reduction <maximumf>, %71, %cst_68 [1] : vector<8x128xf32> to vector<8xf32>
    %145 = vector.shape_cast %144 : vector<8xf32> to vector<8x1xf32>
    %146 = vector.broadcast %145 : vector<8x1xf32> to vector<8x128xf32>
    %147 = arith.cmpf oge, %71, %146 : vector<8x128xf32>
    %c128_i32 = arith.constant 128 : i32
    %148 = vector.broadcast %c128_i32 : i32 to vector<8x128xi32>
    %149 = arith.select %147, %143, %148 : vector<8x128xi1>, vector<8x128xi32>
    %cst_69 = arith.constant dense<2147483647> : vector<8xi32>
    %150 = vector.multi_reduction <minsi>, %149, %cst_69 [1] : vector<8x128xi32> to vector<8xi32>
    %151 = vector.shape_cast %150 : vector<8xi32> to vector<8x1xi32>
    %152 = tpu.iota {dimensions = array<i32: 1>} : vector<8x128xi32>
    %cst_70 = arith.constant dense<0xFF800000> : vector<8xf32>
    %153 = vector.multi_reduction <maximumf>, %133, %cst_70 [1] : vector<8x128xf32> to vector<8xf32>
    %154 = vector.shape_cast %153 : vector<8xf32> to vector<8x1xf32>
    %155 = vector.broadcast %154 : vector<8x1xf32> to vector<8x128xf32>
    %156 = arith.cmpf oge, %133, %155 : vector<8x128xf32>
    %c128_i32_71 = arith.constant 128 : i32
    %157 = vector.broadcast %c128_i32_71 : i32 to vector<8x128xi32>
    %158 = arith.select %156, %152, %157 : vector<8x128xi1>, vector<8x128xi32>
    %cst_72 = arith.constant dense<2147483647> : vector<8xi32>
    %159 = vector.multi_reduction <minsi>, %158, %cst_72 [1] : vector<8x128xi32> to vector<8xi32>
    %160 = vector.shape_cast %159 : vector<8xi32> to vector<8x1xi32>
    %161 = arith.subi %151, %160 : vector<8x1xi32>
    %162 = math.absi %161 : vector<8x1xi32>
    %c1_i32 = arith.constant 1 : i32
    %163 = vector.broadcast %c1_i32 : i32 to vector<8x1xi32>
    %164 = arith.cmpi eq, %162, %163 : vector<8x1xi32>
    %165 = arith.minsi %151, %160 : vector<8x1xi32>
    %c1_i32_73 = arith.constant 1 : i32
    %166 = vector.broadcast %c1_i32_73 : i32 to vector<8x1xi32>
    %167 = arith.andi %165, %166 : vector<8x1xi32>
    %c0_i32 = arith.constant 0 : i32
    %168 = vector.broadcast %c0_i32 : i32 to vector<8x1xi32>
    %169 = arith.cmpi eq, %167, %168 : vector<8x1xi32>
    %170 = arith.andi %164, %169 : vector<8x1xi1>
    %171 = arith.extui %170 : vector<8x1xi1> to vector<8x1xi32>
    %172 = arith.sitofp %171 : vector<8x1xi32> to vector<8x1xf32>
    %cst_74 = arith.constant 0.899999976 : f32
    %173 = vector.broadcast %cst_74 : f32 to vector<8x128xf32>
    %174 = arith.cmpf ogt, %2, %173 : vector<8x128xf32>
    %175 = arith.extui %174 : vector<8x128xi1> to vector<8x128xi32>
    %176 = arith.sitofp %175 : vector<8x128xi32> to vector<8x128xf32>
    %177 = vector.broadcast %172 : vector<8x1xf32> to vector<8x128xf32>
    %178 = arith.mulf %177, %176 : vector<8x128xf32>
    %cst_75 = arith.constant 1.000000e+00 : f32
    %179 = vector.broadcast %cst_75 : f32 to vector<8x128xf32>
    %180 = arith.subf %179, %178 : vector<8x128xf32>
    %181 = arith.mulf %180, %142 : vector<8x128xf32>
    %c1_76 = arith.constant 1 : index
    %c0_77 = arith.constant 0 : index
    %c0_78 = arith.constant 0 : index
    %182 = vector.load %arg13[%c1_76, %c0_77, %c0_78] : memref<3x8x128xf32, #tpu.memory_space<vmem>>, vector<1x8x128xf32>
    %183 = vector.shape_cast %182 : vector<1x8x128xf32> to vector<8x128xf32>
    %184 = vector.shape_cast %181 : vector<8x128xf32> to vector<1x8x128xf32>
    tpu.vector_store %arg13[%c1_76, %c0_77, %c0_78], %184 {strides = array<i32>} : memref<3x8x128xf32, #tpu.memory_space<vmem>>, vector<1x8x128xf32>,
    %c64_i32 = arith.constant 64 : i32
    %185 = tpu.dynamic_rotate %13 by %c64_i32 dim 1 : vector<8x128xf32>, i32 -> vector<8x128xf32>
    %186 = math.tanh %185 : vector<8x128xf32>
    %187 = vector.shape_cast %186 : vector<8x128xf32> to vector<8x1x128xf32>
    %188 = vector.broadcast %187 : vector<8x1x128xf32> to vector<8x8x128xf32>
    %189 = arith.mulf %188, %0 : vector<8x8x128xf32>
    %cst_79 = arith.constant dense<0.000000e+00> : vector<8x8xf32>
    %190 = vector.multi_reduction <add>, %189, %cst_79 [2] : vector<8x8x128xf32> to vector<8x8xf32>
    %cst_80 = arith.constant -1.000000e+30 : f32
    %191 = vector.broadcast %cst_80 : f32 to vector<8x8xf32>
    %192 = arith.select %16, %190, %191 : vector<8x8xi1>, vector<8x8xf32>
    %cst_81 = arith.constant dense<0xFF800000> : vector<8xf32>
    %193 = vector.multi_reduction <maximumf>, %192, %cst_81 [1] : vector<8x8xf32> to vector<8xf32>
    %194 = vector.shape_cast %193 : vector<8xf32> to vector<8x1xf32>
    %195 = vector.broadcast %194 : vector<8x1xf32> to vector<8x8xf32>
    %196 = arith.subf %192, %195 : vector<8x8xf32>
    %197 = math.exp %196 : vector<8x8xf32>
    %cst_82 = arith.constant dense<0.000000e+00> : vector<8xf32>
    %198 = vector.multi_reduction <add>, %197, %cst_82 [1] : vector<8x8xf32> to vector<8xf32>
    %199 = vector.shape_cast %198 : vector<8xf32> to vector<8x1xf32>
    %200 = tpu.reciprocal %199 {approx = true} : vector<8x1xf32> -> vector<8x1xf32>
    %201 = arith.mulf %199, %200 : vector<8x1xf32>
    %cst_83 = arith.constant 2.000000e+00 : f32
    %202 = vector.broadcast %cst_83 : f32 to vector<8x1xf32>
    %203 = arith.subf %202, %201 : vector<8x1xf32>
    %204 = arith.mulf %200, %203 : vector<8x1xf32>
    %205 = vector.broadcast %204 : vector<8x1xf32> to vector<8x8xf32>
    %206 = arith.mulf %197, %205 : vector<8x8xf32>
    %c2 = arith.constant 2 : index
    %c0_84 = arith.constant 0 : index
    %c0_85 = arith.constant 0 : index
    %207 = vector.load %arg11[%c2, %c0_84, %c0_85] : memref<3x8x8xf32, #tpu.memory_space<vmem>>, vector<1x8x8xf32>
    %208 = vector.shape_cast %207 : vector<1x8x8xf32> to vector<8x8xf32>
    %209 = vector.shape_cast %206 : vector<8x8xf32> to vector<1x8x8xf32>
    tpu.vector_store %arg11[%c2, %c0_84, %c0_85], %209 {strides = array<i32>} : memref<3x8x8xf32, #tpu.memory_space<vmem>>, vector<1x8x8xf32>,
    %210 = vector.shape_cast %206 : vector<8x8xf32> to vector<8x8x1xf32>
    %211 = vector.broadcast %210 : vector<8x8x1xf32> to vector<8x8x128xf32>
    %212 = arith.mulf %211, %0 : vector<8x8x128xf32>
    %cst_86 = arith.constant dense<0.000000e+00> : vector<8x128xf32>
    %213 = vector.multi_reduction <add>, %212, %cst_86 [1] : vector<8x8x128xf32> to vector<8x128xf32>
    %c0_87 = arith.constant 0 : index
    %c0_88 = arith.constant 0 : index
    %214 = vector.load %arg5[%c0_87, %c0_88] : memref<128x128xf32, #tpu.memory_space<vmem>>, vector<128x128xf32>
    %cst_89 = arith.constant dense<0.000000e+00> : vector<8x128xf32>
    %215 = tpu.matmul %213, %214, %cst_89 {dimension_numbers = #tpu.dot_dimension_numbers<[1], [0], [0], [1], [0, 0, 1, 1], [], []>} : vector<8x128xf32>, vector<128x128xf32>, vector<8x128xf32> -> vector<8x128xf32>
    %c0_90 = arith.constant 0 : index
    %c0_91 = arith.constant 0 : index
    %216 = vector.load %arg6[%c0_90, %c0_91] : memref<1x128xf32, #tpu.memory_space<vmem>>, vector<1x128xf32>
    %217 = vector.broadcast %216 : vector<1x128xf32> to vector<8x128xf32>
    %218 = arith.addf %215, %217 : vector<8x128xf32>
    %cst_92 = arith.constant -1.000000e+30 : f32
    %219 = vector.broadcast %cst_92 : f32 to vector<8x128xf32>
    %220 = arith.select %19, %218, %219 : vector<8x128xi1>, vector<8x128xf32>
    %cst_93 = arith.constant dense<0xFF800000> : vector<8xf32>
    %221 = vector.multi_reduction <maximumf>, %220, %cst_93 [1] : vector<8x128xf32> to vector<8xf32>
    %222 = vector.shape_cast %221 : vector<8xf32> to vector<8x1xf32>
    %223 = vector.broadcast %222 : vector<8x1xf32> to vector<8x128xf32>
    %224 = arith.subf %220, %223 : vector<8x128xf32>
    %225 = math.exp %224 : vector<8x128xf32>
    %cst_94 = arith.constant dense<0.000000e+00> : vector<8xf32>
    %226 = vector.multi_reduction <add>, %225, %cst_94 [1] : vector<8x128xf32> to vector<8xf32>
    %227 = vector.shape_cast %226 : vector<8xf32> to vector<8x1xf32>
    %228 = tpu.reciprocal %227 {approx = true} : vector<8x1xf32> -> vector<8x1xf32>
    %229 = arith.mulf %227, %228 : vector<8x1xf32>
    %cst_95 = arith.constant 2.000000e+00 : f32
    %230 = vector.broadcast %cst_95 : f32 to vector<8x1xf32>
    %231 = arith.subf %230, %229 : vector<8x1xf32>
    %232 = arith.mulf %228, %231 : vector<8x1xf32>
    %233 = vector.broadcast %232 : vector<8x1xf32> to vector<8x128xf32>
    %234 = arith.mulf %225, %233 : vector<8x128xf32>
    %c2_96 = arith.constant 2 : index
    %c0_97 = arith.constant 0 : index
    %c0_98 = arith.constant 0 : index
    %235 = vector.load %arg12[%c2_96, %c0_97, %c0_98] : memref<3x8x128xf32, #tpu.memory_space<vmem>>, vector<1x8x128xf32>
    %236 = vector.shape_cast %235 : vector<1x8x128xf32> to vector<8x128xf32>
    %237 = vector.shape_cast %234 : vector<8x128xf32> to vector<1x8x128xf32>
    tpu.vector_store %arg12[%c2_96, %c0_97, %c0_98], %237 {strides = array<i32>} : memref<3x8x128xf32, #tpu.memory_space<vmem>>, vector<1x8x128xf32>,
    %cst_99 = arith.constant dense<0.000000e+00> : vector<8x128xf32>
    %238 = tpu.matmul %181, %4, %cst_99 {dimension_numbers = #tpu.dot_dimension_numbers<[1], [0], [0], [1], [0, 0, 1, 1], [], []>} : vector<8x128xf32>, vector<128x128xf32>, vector<8x128xf32> -> vector<8x128xf32>
    %cst_100 = arith.constant dense<0.000000e+00> : vector<8x128xf32>
    %239 = tpu.matmul %234, %6, %cst_100 {dimension_numbers = #tpu.dot_dimension_numbers<[1], [0], [0], [1], [0, 0, 1, 1], [], []>} : vector<8x128xf32>, vector<128x128xf32>, vector<8x128xf32> -> vector<8x128xf32>
    %240 = arith.mulf %238, %239 : vector<8x128xf32>
    %cst_101 = arith.constant dense<0.000000e+00> : vector<8x128xf32>
    %241 = tpu.matmul %240, %8, %cst_101 {dimension_numbers = #tpu.dot_dimension_numbers<[1], [0], [0], [1], [0, 0, 1, 1], [], []>} : vector<8x128xf32>, vector<128x128xf32>, vector<8x128xf32> -> vector<8x128xf32>
    %cst_102 = arith.constant 1.000000e+00 : f32
    %242 = vector.broadcast %cst_102 : f32 to vector<8x128xf32>
    %243 = arith.minimumf %241, %242 : vector<8x128xf32>
    %244 = tpu.iota {dimensions = array<i32: 1>} : vector<8x128xi32>
    %cst_103 = arith.constant dense<0xFF800000> : vector<8xf32>
    %245 = vector.multi_reduction <maximumf>, %133, %cst_103 [1] : vector<8x128xf32> to vector<8xf32>
    %246 = vector.shape_cast %245 : vector<8xf32> to vector<8x1xf32>
    %247 = vector.broadcast %246 : vector<8x1xf32> to vector<8x128xf32>
    %248 = arith.cmpf oge, %133, %247 : vector<8x128xf32>
    %c128_i32_104 = arith.constant 128 : i32
    %249 = vector.broadcast %c128_i32_104 : i32 to vector<8x128xi32>
    %250 = arith.select %248, %244, %249 : vector<8x128xi1>, vector<8x128xi32>
    %cst_105 = arith.constant dense<2147483647> : vector<8xi32>
    %251 = vector.multi_reduction <minsi>, %250, %cst_105 [1] : vector<8x128xi32> to vector<8xi32>
    %252 = vector.shape_cast %251 : vector<8xi32> to vector<8x1xi32>
    %253 = tpu.iota {dimensions = array<i32: 1>} : vector<8x128xi32>
    %cst_106 = arith.constant dense<0xFF800000> : vector<8xf32>
    %254 = vector.multi_reduction <maximumf>, %234, %cst_106 [1] : vector<8x128xf32> to vector<8xf32>
    %255 = vector.shape_cast %254 : vector<8xf32> to vector<8x1xf32>
    %256 = vector.broadcast %255 : vector<8x1xf32> to vector<8x128xf32>
    %257 = arith.cmpf oge, %234, %256 : vector<8x128xf32>
    %c128_i32_107 = arith.constant 128 : i32
    %258 = vector.broadcast %c128_i32_107 : i32 to vector<8x128xi32>
    %259 = arith.select %257, %253, %258 : vector<8x128xi1>, vector<8x128xi32>
    %cst_108 = arith.constant dense<2147483647> : vector<8xi32>
    %260 = vector.multi_reduction <minsi>, %259, %cst_108 [1] : vector<8x128xi32> to vector<8xi32>
    %261 = vector.shape_cast %260 : vector<8xi32> to vector<8x1xi32>
    %262 = arith.subi %252, %261 : vector<8x1xi32>
    %263 = math.absi %262 : vector<8x1xi32>
    %c1_i32_109 = arith.constant 1 : i32
    %264 = vector.broadcast %c1_i32_109 : i32 to vector<8x1xi32>
    %265 = arith.cmpi eq, %263, %264 : vector<8x1xi32>
    %266 = arith.minsi %252, %261 : vector<8x1xi32>
    %c1_i32_110 = arith.constant 1 : i32
    %267 = vector.broadcast %c1_i32_110 : i32 to vector<8x1xi32>
    %268 = arith.andi %266, %267 : vector<8x1xi32>
    %c0_i32_111 = arith.constant 0 : i32
    %269 = vector.broadcast %c0_i32_111 : i32 to vector<8x1xi32>
    %270 = arith.cmpi eq, %268, %269 : vector<8x1xi32>
    %271 = arith.andi %265, %270 : vector<8x1xi1>
    %272 = arith.extui %271 : vector<8x1xi1> to vector<8x1xi32>
    %273 = arith.sitofp %272 : vector<8x1xi32> to vector<8x1xf32>
    %cst_112 = arith.constant 0.899999976 : f32
    %274 = vector.broadcast %cst_112 : f32 to vector<8x128xf32>
    %275 = arith.cmpf ogt, %80, %274 : vector<8x128xf32>
    %276 = arith.extui %275 : vector<8x128xi1> to vector<8x128xi32>
    %277 = arith.sitofp %276 : vector<8x128xi32> to vector<8x128xf32>
    %278 = vector.broadcast %273 : vector<8x1xf32> to vector<8x128xf32>
    %279 = arith.mulf %278, %277 : vector<8x128xf32>
    %cst_113 = arith.constant 1.000000e+00 : f32
    %280 = vector.broadcast %cst_113 : f32 to vector<8x128xf32>
    %281 = arith.subf %280, %279 : vector<8x128xf32>
    %282 = arith.mulf %281, %243 : vector<8x128xf32>
    %c2_114 = arith.constant 2 : index
    %c0_115 = arith.constant 0 : index
    %c0_116 = arith.constant 0 : index
    %283 = vector.load %arg13[%c2_114, %c0_115, %c0_116] : memref<3x8x128xf32, #tpu.memory_space<vmem>>, vector<1x8x128xf32>
    %284 = vector.shape_cast %283 : vector<1x8x128xf32> to vector<8x128xf32>
    %285 = vector.shape_cast %282 : vector<8x128xf32> to vector<1x8x128xf32>
    tpu.vector_store %arg13[%c2_114, %c0_115, %c0_116], %285 {strides = array<i32>} : memref<3x8x128xf32, #tpu.memory_space<vmem>>, vector<1x8x128xf32>,
    %c32_i32 = arith.constant 32 : i32
    %286 = tpu.dynamic_rotate %13 by %c32_i32 dim 1 : vector<8x128xf32>, i32 -> vector<8x128xf32>
    %cst_117 = arith.constant -1.000000e+30 : f32
    %287 = vector.broadcast %cst_117 : f32 to vector<8x128xf32>
    %288 = arith.select %22, %286, %287 : vector<8x128xi1>, vector<8x128xf32>
    %cst_118 = arith.constant dense<0xFF800000> : vector<8xf32>
    %289 = vector.multi_reduction <maximumf>, %288, %cst_118 [1] : vector<8x128xf32> to vector<8xf32>
    %290 = vector.shape_cast %289 : vector<8xf32> to vector<8x1xf32>
    %291 = vector.broadcast %290 : vector<8x1xf32> to vector<8x128xf32>
    %292 = arith.subf %288, %291 : vector<8x128xf32>
    %293 = math.exp %292 : vector<8x128xf32>
    %cst_119 = arith.constant dense<0.000000e+00> : vector<8xf32>
    %294 = vector.multi_reduction <add>, %293, %cst_119 [1] : vector<8x128xf32> to vector<8xf32>
    %295 = vector.shape_cast %294 : vector<8xf32> to vector<8x1xf32>
    %296 = tpu.reciprocal %295 {approx = true} : vector<8x1xf32> -> vector<8x1xf32>
    %297 = arith.mulf %295, %296 : vector<8x1xf32>
    %cst_120 = arith.constant 2.000000e+00 : f32
    %298 = vector.broadcast %cst_120 : f32 to vector<8x1xf32>
    %299 = arith.subf %298, %297 : vector<8x1xf32>
    %300 = arith.mulf %296, %299 : vector<8x1xf32>
    %301 = vector.broadcast %300 : vector<8x1xf32> to vector<8x128xf32>
    %302 = arith.mulf %293, %301 : vector<8x128xf32>
    %303 = vector.extract_strided_slice %302 {offsets = [0, 0], sizes = [8, 1], strides = [1, 1]} : vector<8x128xf32> to vector<8x1xf32>
    %304 = vector.broadcast %303 : vector<8x1xf32> to vector<8x128xf32>
    %305 = arith.mulf %80, %304 : vector<8x128xf32>
    %306 = vector.extract_strided_slice %302 {offsets = [0, 1], sizes = [8, 1], strides = [1, 1]} : vector<8x128xf32> to vector<8x1xf32>
    %307 = vector.broadcast %306 : vector<8x1xf32> to vector<8x128xf32>
    %308 = arith.mulf %181, %307 : vector<8x128xf32>
    %309 = arith.addf %305, %308 : vector<8x128xf32>
    %310 = vector.extract_strided_slice %302 {offsets = [0, 2], sizes = [8, 1], strides = [1, 1]} : vector<8x128xf32> to vector<8x1xf32>
    %311 = vector.broadcast %310 : vector<8x1xf32> to vector<8x128xf32>
    %312 = arith.mulf %282, %311 : vector<8x128xf32>
    %313 = arith.addf %309, %312 : vector<8x128xf32>
    %314 = tpu.iota {dimensions = array<i32: 1>} : vector<8x128xi32>
    %cst_121 = arith.constant dense<0xFF800000> : vector<8xf32>
    %315 = vector.multi_reduction <maximumf>, %302, %cst_121 [1] : vector<8x128xf32> to vector<8xf32>
    %316 = vector.shape_cast %315 : vector<8xf32> to vector<8x1xf32>
    %317 = vector.broadcast %316 : vector<8x1xf32> to vector<8x128xf32>
    %318 = arith.cmpf oge, %302, %317 : vector<8x128xf32>
    %c128_i32_122 = arith.constant 128 : i32
    %319 = vector.broadcast %c128_i32_122 : i32 to vector<8x128xi32>
    %320 = arith.select %318, %314, %319 : vector<8x128xi1>, vector<8x128xi32>
    %cst_123 = arith.constant dense<2147483647> : vector<8xi32>
    %321 = vector.multi_reduction <minsi>, %320, %cst_123 [1] : vector<8x128xi32> to vector<8xi32>
    %322 = vector.shape_cast %321 : vector<8xi32> to vector<8x1xi32>
    %c1_i32_124 = arith.constant 1 : i32
    %323 = vector.broadcast %c1_i32_124 : i32 to vector<8x1xi32>
    %324 = arith.cmpi eq, %322, %323 : vector<8x1xi32>
    %325 = arith.extui %324 : vector<8x1xi1> to vector<8x1xi32>
    %326 = arith.sitofp %325 : vector<8x1xi32> to vector<8x1xf32>
    %327 = vector.broadcast %326 : vector<8x1xf32> to vector<8x128xf32>
    %328 = arith.mulf %327, %2 : vector<8x128xf32>
    %cst_125 = arith.constant 1.000000e+00 : f32
    %329 = vector.broadcast %cst_125 : f32 to vector<8x128xf32>
    %330 = arith.subf %329, %328 : vector<8x128xf32>
    %331 = arith.mulf %330, %313 : vector<8x128xf32>
    %c0_126 = arith.constant 0 : index
    %c0_127 = arith.constant 0 : index
    %332 = vector.load %arg10[%c0_126, %c0_127] : memref<8x128xf32, #tpu.memory_space<vmem>>, vector<8x128xf32>
    tpu.vector_store %arg10[%c0_126, %c0_127], %331 {strides = array<i32>} : memref<8x128xf32, #tpu.memory_space<vmem>>, vector<8x128xf32>,
    return
  }
}

</mosaic_0001>

<bundles_post_ra>
// kernel: custom-call.1
= control target key start
LH: loop header
LB: loop body
LE: loop exit
PB: predicated region body
PF: predicated region fallthrough
CT: control target
= control target key end

     0   :  { %s6_s0 = inlined_call_operand.vmem [shape: f32[2,16], index: 0, kind: output, shape index: {}]  }

// kernel: transfernet_forward.1
= control target key start
LH: loop header
LB: loop body
LE: loop exit
PB: predicated region body
PF: predicated region fallthrough
CT: control target
= control target key end

     0   :  { %v4461_v0 = vmov 0.0   ;;  %vm3174_vm0 = vmmov 0   ;;  %v238_v22 = vlaneseq  ;;  %v3175_v23 = vmov 1966171168   ;;  %s3177_s14 = smov 64   ;;  %s4447_s3 = inlined_call_operand.vmem [shape: f32[128,128], index: 3, kind: input, shape index: {}]   ;;  %s4448_s1 = inlined_call_operand.vmem [shape: f32[8,128], index: 1, kind: input, shape index: {}]   ;;  %s4449_s4 = inlined_call_operand.vmem [shape: f32[1,128], index: 4, kind: input, shape index: {}]   ;;  %s4450_s0 = inlined_call_operand.vmem [shape: f32[8,8,128], index: 0, kind: input, shape index: {}]   ;;  %s4451_s5 = inlined_call_operand.vmem [shape: f32[128,128], index: 5, kind: input, shape index: {}]   ;;  %s4452_s11 = inlined_call_operand.vmem [shape: f32[3,8,8], index: 11, kind: output, shape index: {1}]   ;;  %s4453_s6 = inlined_call_operand.vmem [shape: f32[1,128], index: 6, kind: input, shape index: {}]   ;;  %s4454_s7 = inlined_call_operand.vmem [shape: bf16[128,128], index: 7, kind: input, shape index: {}]   ;;  %s4455_s8 = inlined_call_operand.vmem [shape: bf16[128,128], index: 8, kind: input, shape index: {}]   ;;  %s4456_s2 = inlined_call_operand.vmem [shape: f32[8,128], index: 2, kind: input, shape index: {}]   ;;  %s4457_s12 = inlined_call_operand.vmem [shape: f32[3,8,128], index: 12, kind: output, shape index: {2}]   ;;  %s4458_s9 = inlined_call_operand.vmem [shape: bf16[128,128], index: 9, kind: input, shape index: {}]   ;;  %s4459_s13 = inlined_call_operand.vmem [shape: f32[3,8,128], index: 13, kind: output, shape index: {3}]   ;;  %s4460_s10 = inlined_call_operand.vmem [shape: f32[8,128], index: 10, kind: output, shape index: {0}]  }
   0x1   :  { %2661 = vmatprep.subr.mxu0 %v4461_v0  ;;  %v160_v1 = vld [vmem:[%s4447_s3 + $0x78] sm:$0xff]  ;;  %v159_v2 = vld [vmem:[%s4447_s3 + $0x70] sm:$0xff]  ;;  %2693 = vmatprep.mubr.msk.f32.mxu0 %vm3174_vm0, %v4461_v0  ;;  %v158_v3 = vld [vmem:[%s4447_s3 + $0x68] sm:$0xff]  ;;  %v247_v24 = vunpack.c.l.s4 %v3175_v23  ;;  %vm398_vm1 = vcmask 1041409   ;;  %vm400_vm2 = vcmask 1042434   ;;  %vm402_vm3 = vcmask 1043459  }
   0x2   :  { %2662 = vmatpush3.msra.mxu0 %v160_v1  ;;  %2696 = vmatprep.subr.mxu1 %v4461_v0  ;;  %v157_v4 = vld [vmem:[%s4447_s3 + $0x60] sm:$0xff]  ;;  %v156_v5 = vld [vmem:[%s4447_s3 + $0x58] sm:$0xff]  ;;  %v155_v6 = vld [vmem:[%s4447_s3 + $0x50] sm:$0xff]  ;;  %v3333_v26 = vshrl.u32 %v238_v22, 7  ;;  %vm404_vm4 = vcmask 1044484   ;;  %vm406_vm5 = vcmask 1045509  }
   0x3   :  { %2663 = vmatprep.subr.mxu0 %v4461_v0  ;;  %2728 = vmatprep.mubr.msk.f32.mxu1 %vm3174_vm0, %v4461_v0  ;;  %v154_v7 = vld [vmem:[%s4447_s3 + $0x48] sm:$0xff]  ;;  %v153_v8 = vld [vmem:[%s4447_s3 + $0x40] sm:$0xff]  ;;  %v152_v9 = vld [vmem:[%s4447_s3 + $0x38] sm:$0xff]  ;;  %v248_v25 = vunpack.c.0.s8 %v247_v24  ;;  %vm408_vm6 = vcmask 1046534   ;;  %vm410_vm7 = vcmask 1047559   ;;  %vm414_vm9 = vcmask 64512  }
   0x4   :  { %2664 = vmatpush3.msra.mxu0 %v159_v2  ;;  %v151_v10 = vld [vmem:[%s4447_s3 + $0x30] sm:$0xff]  ;;  %v150_v11 = vld [vmem:[%s4447_s3 + $0x28] sm:$0xff]  ;;  %v149_v12 = vld [vmem:[%s4447_s3 + $0x20] sm:$0xff]  ;;  %v3340_v30 = vsub.s32 0, %v3333_v26 }
   0x5   :  { %2665 = vmatprep.subr.mxu0 %v4461_v0  ;;  %v148_v13 = vld [vmem:[%s4447_s3 + $0x18] sm:$0xff]  ;;  %v147_v14 = vld [vmem:[%s4447_s3 + $0x10] sm:$0xff]  ;;  %v146_v15 = vld [vmem:[%s4447_s3 + $0x8] sm:$0xff]  ;;  %v3336_v27 = vsub.s32 %v248_v25, %v3333_v26 }
   0x6   :  { %2666 = vmatpush3.msra.mxu0 %v158_v3  ;;  %v145_v16 = vld [vmem:[%s4447_s3] sm:$0xff]  ;;  %v3354_v39 = vld [vmem:[%s4450_s0 + $0x10] sm:$0xff]  ;;  %v3363_v46 = vld [vmem:[%s4450_s0 + $0x8] sm:$0xff] }
   0x7   :  { %2667 = vmatprep.subr.mxu0 %v4461_v0  ;;  %v47_v17 = vld [vmem:[%s4448_s1] sm:$0xff]  ;;  %v3371_v50 = vld [vmem:[%s4450_s0 + $0x18] sm:$0xff]  ;;  %v3385_v58 = vld [vmem:[%s4450_s0 + $0x28] sm:$0xff] }
   0x8   :  { %2668 = vmatpush3.msra.mxu0 %v157_v4  ;;  %v2306_v18 = vld [vmem:[%s4449_s4] ss:$0 sm:$0xff]  ;;  %v3392_v61 = vld [vmem:[%s4450_s0 + $0x30] sm:$0xff]  ;;  %v3399_v1 = vld [vmem:[%s4450_s0 + $0x38] sm:$0xff]  ;;  %v3403_v4 = vand.u32 127, %v238_v22  ;;  %s3176_s4 = smov 96  }
   0x9   :  { %2669 = vmatprep.subr.mxu0 %v4461_v0  ;;  %v3347_v35 = vld [vmem:[%s4450_s0] sm:$0xff] }
   0xa   :  { %2670 = vmatpush3.msra.mxu0 %v156_v5  ;;  %v3378_v54 = vld [vmem:[%s4450_s0 + $0x20] sm:$0xff]  ;;  %4542 = vst [vmem:[#allocation3_spill] sm:$0xff] %v3403_v4  ;;  %vm240_vm8 = vcmp.lt.s32.totalorder %v3403_v4, 8  ;;  %vm241_vm10 = vcmp.lt.s32.totalorder %v3403_v4, 6 }
   0xb   :  { %2671 = vmatprep.subr.mxu0 %v4461_v0 }
   0xc   :  { %2672 = vmatpush3.msra.mxu0 %v155_v6  ;;  %v3407_v6 = vsub.s32 %v3403_v4, %v3333_v26 }
   0xd   :  { %2673 = vmatprep.subr.mxu0 %v4461_v0 }
   0xe   :  { %2674 = vmatpush3.msra.mxu0 %v154_v7  ;;  %4543 = vst [vmem:[#allocation4_spill] sm:$0xff] %v3407_v6 }
   0xf   :  { %2675 = vmatprep.subr.mxu0 %v4461_v0 }
  0x10   :  { %2676 = vmatpush3.msra.mxu0 %v153_v8 }
  0x11   :  { %2677 = vmatprep.subr.mxu0 %v4461_v0 }
  0x12   :  { %2678 = vmatpush3.msra.mxu0 %v152_v9 }
  0x13   :  { %2679 = vmatprep.subr.mxu0 %v4461_v0 }
  0x14   :  { %2680 = vmatpush3.msra.mxu0 %v151_v10 }
  0x15   :  { %2681 = vmatprep.subr.mxu0 %v4461_v0 }
  0x16   :  { %2682 = vmatpush3.msra.mxu0 %v150_v11 }
  0x17   :  { %2683 = vmatprep.subr.mxu0 %v4461_v0 }
  0x18   :  { %2684 = vmatpush3.msra.mxu0 %v149_v12 }
  0x19   :  { %2685 = vmatprep.subr.mxu0 %v4461_v0 }
  0x1a   :  { %2686 = vmatpush3.msra.mxu0 %v148_v13 }
  0x1b   :  { %2687 = vmatprep.subr.mxu0 %v4461_v0 }
  0x1c   :  { %2688 = vmatpush3.msra.mxu0 %v147_v14 }
  0x1d   :  { %2689 = vmatprep.subr.mxu0 %v4461_v0 }
  0x1e   :  { %2690 = vmatpush3.msra.mxu0 %v146_v15 }
  0x1f   :  { %2691 = vmatprep.subr.mxu0 %v4461_v0 }
  0x20   :  { %2692 = vmatpush3.msra.mxu0 %v145_v16 }
  0x21   :  { %2694 = vmatmul.mubr.f32.vlgmr.msra.gmra.mxu0 %v47_v17  ;;  %2731 = vmatprep.subr.mxu0 %v4461_v0 }
  0x22   :  { %2763 = vmatprep.mubr.msk.f32.mxu0 %vm3174_vm0, %v4461_v0 }
  0xe1   :  { %v234_v19 = vpop.f32.mrf.mxu0 }
  0xe2   :  { %v3330_v20 = vadd.f32 %v2306_v18, %v234_v19 }
  0xe3   :  { %v2695_v21 = vpop.f32.mrf.mxu0 }
  0xe4   :  { %4541 = vst [vmem:[#allocation2_spill] sm:$0xff] %v3330_v20  ;;  %3129 = vtanh.f32 %v3330_v20 }
  0xf1   :  { %v3130_v28 = vpop.eup %3129 }
  0xf2   :  { %v252_v29 = vrot.slane %v3130_v28, %v3336_v27  ;;  %v245_v31 = vcombine.high %v3130_v28, %v3130_v28 }
  0xf4   :  { %v268_v32 = vrot.slane %v252_v29, %v3336_v27  ;;  %v260_v33 = vcombine.high %v252_v29, %v252_v29  ;;  %v259_v34 = vrot.slane %v245_v31, %v3336_v27 }
  0xf6   :  { %v297_v36 = vrot.slane %v268_v32, %v3340_v30  ;;  %v290_v37 = vcombine.high %v268_v32, %v268_v32  ;;  %v282_v38 = vrot.slane %v260_v33, %v3336_v27  ;;  %v275_v40 = vrot.slane %v259_v34, %v3336_v27 }
  0xf7   :  { %v261_v41 = vcombine.high %v259_v34, %v259_v34 }
  0xf8   :  { %v334_v42 = vmul.f32 %v297_v36, %v3347_v35  ;;  %v305_v43 = vrot.slane %v290_v37, %v3340_v30  ;;  %v301_v44 = vrot.slane %v282_v38, %v3340_v30  ;;  %v292_v45 = vcombine.high %v282_v38, %v282_v38 }
  0xf9   :  { %v289_v49 = vrot.slane %v261_v41, %v3336_v27  ;;  %v313_v52 = vrot.slane %v275_v40, %v3340_v30  ;;  %v291_v53 = vcombine.high %v275_v40, %v275_v40 }
  0xfa   :  { %342 = vadd.xlane.f32.xlu0 %v334_v42  ;;  %v336_v47 = vmul.f32 %v305_v43, %v3354_v39  ;;  %v309_v48 = vrot.slane %v292_v45, %v3340_v30  ;;  %v335_v51 = vmul.f32 %v301_v44, %v3363_v46  ;;  %v3432_v43 = vld [vmem:[%s4451_s5 + $0x78] sm:$0xff]  ;;  %v3439_v45 = vld [vmem:[%s4451_s5 + $0x70] sm:$0xff] }
  0xfb   :  { %v317_v56 = vrot.slane %v289_v49, %v3340_v30  ;;  %v293_v57 = vcombine.high %v289_v49, %v289_v49  ;;  %v338_v59 = vmul.f32 %v313_v52, %v3378_v54  ;;  %v321_v60 = vrot.slane %v291_v53, %v3340_v30  ;;  %2697 = vmatpush3.msra.mxu1 %v3432_v43 }
  0xfc   :  { %346 = vadd.xlane.f32.xlu1 %v336_v47  ;;  %v337_v55 = vmul.f32 %v309_v48, %v3371_v50  ;;  %2698 = vmatprep.subr.mxu1 %v4461_v0  ;;  %v3446_v48 = vld [vmem:[%s4451_s5 + $0x68] sm:$0xff]  ;;  %v3456_v53 = vsub.s32 1, %v3333_v26 }
  0xfd   :  { %v339_v62 = vmul.f32 %v317_v56, %v3385_v58  ;;  %v325_v63 = vrot.slane %v293_v57, %v3340_v30  ;;  %v340_v2 = vmul.f32 %v321_v60, %v3392_v61  ;;  %2699 = vmatpush3.msra.mxu1 %v3439_v45  ;;  %v3470_v57 = vld [vmem:[%s4451_s5 + $0x50] sm:$0xff] }
  0xfe   :  { %344 = vadd.xlane.f32.xlu0 %v335_v51  ;;  %2700 = vmatprep.subr.mxu1 %v4461_v0  ;;  %v3453_v51 = vld [vmem:[%s4451_s5 + $0x60] sm:$0xff]  ;;  %4544 = vst [vmem:[#allocation5_spill] sm:$0xff] %v3456_v53 }
  0xff   :  { %v341_v3 = vmul.f32 %v325_v63, %v3399_v1  ;;  %2701 = vmatpush3.msra.mxu1 %v3446_v48  ;;  %v3482_v63 = vsub.s32 4, %v3333_v26 }
 0x100   :  { %348 = vadd.xlane.f32.xlu1 %v337_v55  ;;  %2702 = vmatprep.subr.mxu1 %v4461_v0  ;;  %v3463_v55 = vld [vmem:[%s4451_s5 + $0x58] sm:$0xff] }
 0x101   :  { %2703 = vmatpush3.msra.mxu1 %v3453_v51  ;;  %4546 = vst [vmem:[#allocation7_spill] sm:$0xff] %v3482_v63 }
 0x102   :  { %350 = vadd.xlane.f32.xlu0 %v338_v59  ;;  %2704 = vmatprep.subr.mxu1 %v4461_v0 }
 0x103   :  { %2705 = vmatpush3.msra.mxu1 %v3463_v55 }
 0x104   :  { %352 = vadd.xlane.f32.xlu1 %v339_v62  ;;  %2706 = vmatprep.subr.mxu1 %v4461_v0  ;;  %v3479_v62 = vsub.s32 2, %v3333_v26 }
 0x105   :  { %2707 = vmatpush3.msra.mxu1 %v3470_v57 }
 0x106   :  { %354 = vadd.xlane.f32.xlu0 %v340_v2  ;;  %4545 = vst [vmem:[#allocation6_spill] sm:$0xff] %v3479_v62  ;;  %2708 = vmatprep.subr.mxu1 %v4461_v0  ;;  %v3489_v2 = vld [vmem:[%s4451_s5 + $0x48] sm:$0xff] }
 0x107   :  { %2709 = vmatpush3.msra.mxu1 %v3489_v2 }
 0x108   :  { %356 = vadd.xlane.f32.xlu1 %v341_v3  ;;  %v3495_v3 = vld [vmem:[%s4451_s5 + $0x40] sm:$0xff]  ;;  %2710 = vmatprep.subr.mxu1 %v4461_v0 }
 0x109   :  { %2711 = vmatpush3.msra.mxu1 %v3495_v3 }
 0x10a   :  { %2712 = vmatprep.subr.mxu1 %v4461_v0 }
 0x183   :  { %v343_v5 = vpop.xlane.xlu0 %342 }
 0x184   :  { %v369_v9 = vrot.slane %v343_v5, %v3407_v6 }
 0x185   :  { %v347_v7 = vpop.xlane.xlu1 %346 }
 0x186   :  { %v377_v11 = vrot.slane %v347_v7, %v3407_v6 }
 0x187   :  { %v345_v8 = vpop.xlane.xlu0 %344 }
 0x188   :  { %v373_v10 = vrot.slane %v345_v8, %v3407_v6  ;;  %v3500_v8 = vsub.s32 3, %v3333_v26 }
 0x189   :  { %v349_v12 = vpop.xlane.xlu1 %348 }
 0x18a   :  { %v399_v13 = vsel %vm398_vm1, %v373_v10, %v369_v9  ;;  %v381_v14 = vrot.slane %v349_v12, %v3407_v6  ;;  %4547 = vst [vmem:[#allocation8_spill] sm:$0xff] %v3500_v8  ;;  %v3503_v9 = vsub.s32 6, %v3333_v26  ;;  %v3510_v10 = vld [vmem:[%s4451_s5 + $0x38] sm:$0xff] }
 0x18b   :  { %v401_v15 = vsel %vm400_vm2, %v377_v11, %v399_v13  ;;  %v351_v16 = vpop.xlane.xlu0 %350  ;;  %v3516_v13 = vsub.s32 5, %v3333_v26  ;;  %2713 = vmatpush3.msra.mxu1 %v3510_v10 }
 0x18c   :  { %v403_v17 = vsel %vm402_vm3, %v381_v14, %v401_v15  ;;  %v385_v18 = vrot.slane %v351_v16, %v3407_v6  ;;  %4548 = vst [vmem:[#allocation9_spill] sm:$0xff] %v3503_v9  ;;  %v3522_v14 = vld [vmem:[%s4451_s5 + $0x30] sm:$0xff]  ;;  %2714 = vmatprep.subr.mxu1 %v4461_v0  ;;  %v3528_v15 = vld [vmem:[%s4451_s5 + $0x28] sm:$0xff] }
 0x18d   :  { %v353_v19 = vpop.xlane.xlu1 %352  ;;  %4549 = vst [vmem:[#allocation10_spill] sm:$0xff] %v3516_v13  ;;  %2715 = vmatpush3.msra.mxu1 %v3522_v14 }
 0x18e   :  { %v405_v21 = vsel %vm404_vm4, %v385_v18, %v403_v17  ;;  %v389_v22 = vrot.slane %v353_v19, %v3407_v6  ;;  %v3533_v17 = vsub.s32 7, %v3333_v26  ;;  %2716 = vmatprep.subr.mxu1 %v4461_v0  ;;  %v3540_v18 = vld [vmem:[%s4451_s5 + $0x20] sm:$0xff]  ;;  %v3547_v26 = vld [vmem:[%s4451_s5 + $0x18] sm:$0xff] }
 0x18f   :  { %v355_v23 = vpop.xlane.xlu0 %354  ;;  %2717 = vmatpush3.msra.mxu1 %v3528_v15  ;;  %4551 = vst [vmem:[#allocation12_spill] sm:$0xff] %v3547_v26 }
 0x190   :  { %v407_v24 = vsel %vm406_vm5, %v389_v22, %v405_v21  ;;  %v393_v25 = vrot.slane %v355_v23, %v3407_v6  ;;  %4550 = vst [vmem:[#allocation11_spill] sm:$0xff] %v3533_v17  ;;  %2718 = vmatprep.subr.mxu1 %v4461_v0  ;;  %v3555_v21 = vld [vmem:[%s4451_s5 + $0x10] sm:$0xff]  ;;  %v3562_v22 = vld [vmem:[%s4451_s5 + $0x8] sm:$0xff]  ;;  %v3569_v23 = vld [vmem:[%s4451_s5] sm:$0xff] }
 0x191   :  { %v357_v28 = vpop.xlane.xlu1 %356  ;;  %2719 = vmatpush3.msra.mxu1 %v3540_v18  ;;  %4552 = vst [vmem:[#allocation13_spill] sm:$0xff] %v3555_v21  ;;  %4553 = vst [vmem:[#allocation14_spill] sm:$0xff] %v3562_v22 }
 0x192   :  { %v397_v29 = vrot.slane %v357_v28, %v3407_v6  ;;  %v409_v31 = vsel %vm408_vm6, %v393_v25, %v407_v24  ;;  %2720 = vmatprep.subr.mxu1 %v4461_v0  ;;  %4554 = vst [vmem:[#allocation15_spill] sm:$0xff] %v3569_v23 }
 0x193   :  { %2721 = vmatpush3.msra.mxu1 %v3547_v26 }
 0x194   :  { %v411_v32 = vsel %vm410_vm7, %v397_v29, %v409_v31  ;;  %2722 = vmatprep.subr.mxu1 %v4461_v0 }
 0x195   :  { %v413_v33 = vsel %vm240_vm8, %v411_v32, -1e+30  ;;  %2723 = vmatpush3.msra.mxu1 %v3555_v21 }
 0x196   :  { %v415_v34 = vsel %vm414_vm9, %v413_v33, -inf  ;;  %2724 = vmatprep.subr.mxu1 %v4461_v0 }
 0x197   :  { %416 = vmax.xlane.f32.xlu0 %v415_v34  ;;  %2725 = vmatpush3.msra.mxu1 %v3562_v22 }
 0x198   :  { %2726 = vmatprep.subr.mxu1 %v4461_v0 }
 0x199   :  { %2727 = vmatpush3.msra.mxu1 %v3569_v23 }
 0x19a   :  { %2766 = vmatprep.subr.mxu1 %v4461_v0 }
 0x220   :  { %v417_v36 = vpop.xlane.xlu0 %416 }
 0x221   :  { %v418_v37 = vsub.f32 %v413_v33, %v417_v36 }
 0x223   :  { %v419_v38 = vmul.f32 1.442695, %v418_v37 }
 0x225   :  { %3131 = vpow2.f32 %v419_v38 }
 0x232   :  { %v3132_v40 = vpop.eup %3131 }
 0x233   :  { %v421_v41 = vsel %vm414_vm9, %v3132_v40, 0.0 }
 0x234   :  { %422 = vadd.xlane.f32.xlu1 %v421_v41 }
 0x2bd   :  { %v423_v42 = vpop.xlane.xlu1 %422 }
 0x2be   :  { %3133 = vrcp.f32 %v423_v42 }
 0x2cb   :  { %v3134_v44 = vpop.eup %3133 }
 0x2cc   :  { %v425_v47 = vmul.f32 %v3134_v44, %v423_v42 }
 0x2ce   :  { %v426_v49 = vsub.f32 2.0, %v425_v47 }
 0x2d0   :  { %v427_v52 = vmul.f32 %v3134_v44, %v426_v49 }
 0x2d2   :  { %v428_v56 = vmul.f32 %v3132_v40, %v427_v52 }
 0x2d4   :  { %429 = vst.msk [vmem:[%s4452_s11] sm:$0xff] %vm414_vm9, %v428_v56  ;;  %v440_v59 = vrot.slane %v428_v56, %v3456_v53  ;;  %v433_v60 = vrot.slane %v428_v56, %v3340_v30  ;;  %v447_v5 = vrot.slane %v428_v56, %v3479_v62  ;;  %v461_v7 = vrot.slane %v428_v56, %v3482_v63 }
 0x2d5   :  { %v454_v11 = vrot.slane %v428_v56, %v3500_v8  ;;  %v475_v12 = vrot.slane %v428_v56, %v3503_v9  ;;  %v468_v16 = vrot.slane %v428_v56, %v3516_v13  ;;  %v482_v19 = vrot.slane %v428_v56, %v3533_v17 }
 0x2d6   :  { %442 = vbcast.lane.b32.xlu1 %v440_v59, 256  ;;  %435 = vbcast.lane.b32.xlu0 %v433_v60, 256 }
 0x2da   :  { %449 = vbcast.lane.b32.xlu1 %v447_v5, 256  ;;  %463 = vbcast.lane.b32.xlu0 %v461_v7, 256 }
 0x2de   :  { %456 = vbcast.lane.b32.xlu1 %v454_v11, 256  ;;  %477 = vbcast.lane.b32.xlu0 %v475_v12, 256 }
 0x2e2   :  { %470 = vbcast.lane.b32.xlu1 %v468_v16, 256  ;;  %878 = vrot.lane.b32.xlu0 %v3330_v20, %s3176_s4 }
 0x2e6   :  { %484 = vbcast.lane.b32.xlu1 %v482_v19, 256 }
 0x348   :  { %v443_v24 = vpop.permute.xlu1 %442  ;;  %v436_v25 = vpop.permute.xlu0 %435 }
 0x349   :  { %v487_v28 = vmul.f32 %v443_v24, %v3363_v46  ;;  %v486_v29 = vmul.f32 %v436_v25, %v3347_v35 }
 0x34b   :  { %v500_v31 = vrot.slane %v487_v28, 4  ;;  %v494_v32 = vrot.slane %v486_v29, 4 }
 0x34c   :  { %v450_v33 = vpop.permute.xlu1 %449  ;;  %v464_v34 = vpop.permute.xlu0 %463 }
 0x34d   :  { %v501_v36 = vadd.f32 %v500_v31, %v487_v28  ;;  %v495_v37 = vadd.f32 %v494_v32, %v486_v29  ;;  %v488_v38 = vmul.f32 %v450_v33, %v3354_v39  ;;  %v490_v40 = vmul.f32 %v464_v34, %v3378_v54 }
 0x34f   :  { %v502_v41 = vrot.slane %v501_v36, 2  ;;  %v496_v42 = vrot.slane %v495_v37, 2  ;;  %v506_v44 = vrot.slane %v488_v38, 4  ;;  %v518_v47 = vrot.slane %v490_v40, 4 }
 0x350   :  { %v457_v49 = vpop.permute.xlu1 %456  ;;  %v478_v52 = vpop.permute.xlu0 %477 }
 0x351   :  { %v503_v56 = vadd.f32 %v502_v41, %v501_v36  ;;  %v497_v59 = vadd.f32 %v496_v42, %v495_v37  ;;  %v507_v60 = vadd.f32 %v506_v44, %v488_v38  ;;  %v519_v5 = vadd.f32 %v518_v47, %v490_v40 }
 0x352   :  { %v489_v7 = vmul.f32 %v457_v49, %v3371_v50  ;;  %v492_v11 = vmul.f32 %v478_v52, %v3392_v61 }
 0x353   :  { %v508_v12 = vrot.slane %v507_v60, 2  ;;  %v504_v28 = vrot.slane %v503_v56, 1  ;;  %v498_v29 = vrot.slane %v497_v59, 1  ;;  %v520_v32 = vrot.slane %v519_v5, 2 }
 0x354   :  { %v512_v16 = vrot.slane %v489_v7, 4  ;;  %v530_v19 = vrot.slane %v492_v11, 4  ;;  %v471_v24 = vpop.permute.xlu1 %470  ;;  %v879_v25 = vpop.permute.xlu0 %878 }
 0x355   :  { %v509_v31 = vadd.f32 %v508_v12, %v507_v60  ;;  %v491_v36 = vmul.f32 %v471_v24, %v3385_v58  ;;  %3135 = vtanh.f32 %v879_v25  ;;  %v521_v44 = vadd.f32 %v520_v32, %v519_v5 }
 0x356   :  { %v513_v33 = vadd.f32 %v512_v16, %v489_v7  ;;  %v531_v34 = vadd.f32 %v530_v19, %v492_v11  ;;  %v505_v49 = vadd.f32 %v504_v28, %v503_v56  ;;  %v499_v52 = vadd.f32 %v498_v29, %v497_v59 }
 0x357   :  { %v510_v37 = vrot.slane %v509_v31, 1  ;;  %v524_v41 = vrot.slane %v491_v36, 4  ;;  %v522_v16 = vrot.slane %v521_v44, 1 }
 0x358   :  { %v514_v38 = vrot.slane %v513_v33, 2  ;;  %v532_v40 = vrot.slane %v531_v34, 2  ;;  %v485_v42 = vpop.permute.xlu1 %484  ;;  %v573_v24 = vsel %vm398_vm1, %v505_v49, %v499_v52 }
 0x359   :  { %v493_v47 = vmul.f32 %v485_v42, %v3399_v1  ;;  %v525_v23 = vadd.f32 %v524_v41, %v491_v36  ;;  %v511_v22 = vadd.f32 %v510_v37, %v509_v31  ;;  %v523_v59 = vadd.f32 %v522_v16, %v521_v44 }
 0x35a   :  { %v515_v0 = vadd.f32 %v514_v38, %v513_v33  ;;  %v533_v7 = vadd.f32 %v532_v40, %v531_v34 }
 0x35b   :  { %v536_v60 = vrot.slane %v493_v47, 4  ;;  %v526_v11 = vrot.slane %v525_v23, 2  ;;  %v574_v26 = vsel %vm400_vm2, %v511_v22, %v573_v24 }
 0x35c   :  { %v516_v12 = vrot.slane %v515_v0, 1  ;;  %v534_v32 = vrot.slane %v533_v7, 1 }
 0x35d   :  { %v537_v19 = vadd.f32 %v536_v60, %v493_v47  ;;  %v527_v21 = vadd.f32 %v526_v11, %v525_v23  ;;  %v4555_v60 = vmov 0.0  }
 0x35e   :  { %v517_v25 = vadd.f32 %v516_v12, %v515_v0  ;;  %v535_v36 = vadd.f32 %v534_v32, %v533_v7 }
 0x35f   :  { %v538_v5 = vrot.slane %v537_v19, 2  ;;  %v528_v42 = vrot.slane %v527_v21, 1 }
 0x360   :  { %v575_v56 = vsel %vm402_vm3, %v517_v25, %v574_v26 }
 0x361   :  { %v539_v28 = vadd.f32 %v538_v5, %v537_v19  ;;  %v529_v29 = vadd.f32 %v528_v42, %v527_v21  ;;  %v576_v34 = vsel %vm404_vm4, %v523_v59, %v575_v56 }
 0x362   :  { %v3136_v31 = vpop.eup %3135 }
 0x363   :  { %v540_v33 = vrot.slane %v539_v28, 1  ;;  %v577_v37 = vsel %vm406_vm5, %v529_v29, %v576_v34  ;;  %v889_v0 = vrot.slane %v3136_v31, %v3336_v27  ;;  %v882_v23 = vcombine.high %v3136_v31, %v3136_v31 }
 0x364   :  { %v578_v22 = vsel %vm408_vm6, %v535_v36, %v577_v37 }
 0x365   :  { %v541_v38 = vadd.f32 %v540_v33, %v539_v28  ;;  %v905_v40 = vrot.slane %v889_v0, %v3336_v27  ;;  %v897_v41 = vcombine.high %v889_v0, %v889_v0  ;;  %v896_v26 = vrot.slane %v882_v23, %v3336_v27 }
 0x367   :  { %v579_v21 = vsel %vm410_vm7, %v541_v38, %v578_v22  ;;  %v934_v44 = vrot.slane %v905_v40, %v3340_v30  ;;  %v919_v47 = vrot.slane %v897_v41, %v3336_v27  ;;  %v912_v49 = vrot.slane %v896_v26, %v3336_v27 }
 0x368   :  { %2729 = vmatmul.mubr.f32.vlgmr.msra.gmra.mxu1 %v579_v21  ;;  %v927_v52 = vcombine.high %v905_v40, %v905_v40  ;;  %v898_v5 = vcombine.high %v896_v26, %v896_v26 }
 0x369   :  { %2798 = vmatprep.mubr.msk.f32.mxu1 %vm3174_vm0, %v4555_v60  ;;  %v971_v12 = vmul.f32 %v934_v44, %v3347_v35  ;;  %v938_v7 = vrot.slane %v919_v47, %v3340_v30  ;;  %v950_v11 = vrot.slane %v912_v49, %v3340_v30  ;;  %v928_v16 = vcombine.high %v912_v49, %v912_v49 }
 0x36a   :  { %v942_v24 = vrot.slane %v927_v52, %v3340_v30  ;;  %v929_v25 = vcombine.high %v919_v47, %v919_v47  ;;  %v926_v59 = vrot.slane %v898_v5, %v3336_v27 }
 0x36b   :  { %979 = vadd.xlane.f32.xlu1 %v971_v12  ;;  %v972_v19 = vmul.f32 %v938_v7, %v3363_v46  ;;  %v975_v32 = vmul.f32 %v950_v11, %v3378_v54  ;;  %v958_v42 = vrot.slane %v928_v16, %v3340_v30 }
 0x36c   :  { %v973_v35 = vmul.f32 %v942_v24, %v3354_v39  ;;  %v946_v56 = vrot.slane %v929_v25, %v3340_v30  ;;  %v954_v29 = vrot.slane %v926_v59, %v3340_v30  ;;  %v930_v31 = vcombine.high %v926_v59, %v926_v59  ;;  %v3635_v25 = vld [vmem:[%s4453_s6] ss:$0 sm:$0xff] }
 0x36d   :  { %981 = vadd.xlane.f32.xlu0 %v972_v19  ;;  %v977_v28 = vmul.f32 %v958_v42, %v3392_v61  ;;  %4556 = vst [vmem:[#allocation16_spill] sm:$0xff] %v3635_v25 }
 0x36e   :  { %v974_v46 = vmul.f32 %v946_v56, %v3371_v50  ;;  %v976_v54 = vmul.f32 %v954_v29, %v3385_v58  ;;  %v962_v33 = vrot.slane %v930_v31, %v3340_v30 }
 0x36f   :  { %987 = vadd.xlane.f32.xlu1 %v975_v32 }
 0x370   :  { %v978_v39 = vmul.f32 %v962_v33, %v3399_v1 }
 0x371   :  { %983 = vadd.xlane.f32.xlu0 %v973_v35 }
 0x373   :  { %991 = vadd.xlane.f32.xlu1 %v977_v28 }
 0x375   :  { %985 = vadd.xlane.f32.xlu0 %v974_v46 }
 0x379   :  { %989 = vadd.xlane.f32.xlu0 %v976_v54 }
 0x37d   :  { %993 = vadd.xlane.f32.xlu0 %v978_v39 }
 0x3f4   :  { %v980_v36 = vpop.xlane.xlu1 %979 }
 0x3f5   :  { %v1006_v50 = vrot.slane %v980_v36, %v3407_v6  ;;  %v2432_v36 = vld [vmem:[%s4455_s8 + $0x38] sm:$0xff]  }
 0x3f6   :  { %v982_v34 = vpop.xlane.xlu0 %981 }
 0x3f7   :  { %v1010_v61 = vrot.slane %v982_v34, %v3407_v6  ;;  %v2425_v34 = vld [vmem:[%s4454_s7 + $0x38] sm:$0xff]  }
 0x3f8   :  { %v988_v23 = vpop.xlane.xlu1 %987 }
 0x3f9   :  { %v1035_v22 = vsel %vm398_vm1, %v1010_v61, %v1006_v50  ;;  %v1022_v41 = vrot.slane %v988_v23, %v3407_v6  ;;  %v3656_v61 = vunpack.c.h.bf16 %v2432_v36  ;;  %v3660_v50 = vunpack.c.l.bf16 %v2432_v36  ;;  %v2424_v23 = vld [vmem:[%s4454_s7 + $0x30] sm:$0xff]   ;;  %v2426_v36 = vld [vmem:[%s4455_s8 + $0x8] sm:$0xff]  }
 0x3fa   :  { %v984_v37 = vpop.xlane.xlu0 %983 }
 0x3fb   :  { %v1014_v0 = vrot.slane %v984_v37, %v3407_v6  ;;  %v3654_v37 = vunpack.c.h.bf16 %v2425_v34  ;;  %2767 = vmatpush3.msra.mxu1 %v3656_v61 }
 0x3fc   :  { %v992_v21 = vpop.xlane.xlu1 %991  ;;  %2768 = vmatprep.subr.mxu1 %v4555_v60 }
 0x3fd   :  { %v1036_v40 = vsel %vm400_vm2, %v1014_v0, %v1035_v22  ;;  %v1030_v52 = vrot.slane %v992_v21, %v3407_v6  ;;  %v3658_v0 = vunpack.c.l.bf16 %v2425_v34  ;;  %2732 = vmatpush3.msra.mxu0 %v3654_v37  ;;  %2769 = vmatpush3.msra.mxu1 %v3660_v50  ;;  %v3674_v22 = vunpack.c.h.bf16 %v2424_v23  ;;  %v2419_v34 = vld [vmem:[%s4454_s7 + $0x8] sm:$0xff]  }
 0x3fe   :  { %v986_v38 = vpop.xlane.xlu0 %985  ;;  %2733 = vmatprep.subr.mxu0 %v4555_v60  ;;  %2770 = vmatprep.subr.mxu1 %v4555_v60 }
 0x3ff   :  { %v1018_v58 = vrot.slane %v986_v38, %v3407_v6  ;;  %v2431_v38 = vld [vmem:[%s4455_s8 + $0x30] sm:$0xff]   ;;  %2734 = vmatpush3.msra.mxu0 %v3658_v0 }
 0x400   :  { %2735 = vmatprep.subr.mxu0 %v4555_v60 }
 0x401   :  { %v1037_v1 = vsel %vm402_vm3, %v1018_v58, %v1036_v40  ;;  %v3676_v58 = vunpack.c.h.bf16 %v2431_v38  ;;  %v3678_v40 = vunpack.c.l.bf16 %v2424_v23  ;;  %2736 = vmatpush3.msra.mxu0 %v3674_v22  ;;  %v3784_v23 = vunpack.c.h.bf16 %v2419_v34 }
 0x402   :  { %v990_v26 = vpop.xlane.xlu0 %989  ;;  %v1038_v47 = vsel %vm404_vm4, %v1022_v41, %v1037_v1  ;;  %v3680_v1 = vunpack.c.l.bf16 %v2431_v38  ;;  %2737 = vmatprep.subr.mxu0 %v4555_v60  ;;  %v2423_v41 = vld [vmem:[%s4454_s7 + $0x28] sm:$0xff]   ;;  %v3786_v38 = vunpack.c.h.bf16 %v2426_v36 }
 0x403   :  { %v1026_v44 = vrot.slane %v990_v26, %v3407_v6  ;;  %2771 = vmatpush3.msra.mxu1 %v3676_v58  ;;  %v2430_v26 = vld [vmem:[%s4455_s8 + $0x28] sm:$0xff]   ;;  %2738 = vmatpush3.msra.mxu0 %v3678_v40  ;;  %v3696_v21 = vunpack.c.h.bf16 %v2423_v41  ;;  %4565 = vst [vmem:[#allocation25_spill] sm:$0xff] %v3784_v23 }
 0x404   :  { %2772 = vmatprep.subr.mxu1 %v4555_v60  ;;  %2739 = vmatprep.subr.mxu0 %v4555_v60 }
 0x405   :  { %v1039_v49 = vsel %vm406_vm5, %v1026_v44, %v1038_v47  ;;  %2773 = vmatpush3.msra.mxu1 %v3680_v1  ;;  %4557 = vst [vmem:[#allocation17_spill] sm:$0xff] %v3696_v21  ;;  %v3698_v44 = vunpack.c.h.bf16 %v2430_v26  ;;  %2740 = vmatpush3.msra.mxu0 %v3696_v21  ;;  %v3704_v47 = vunpack.c.l.bf16 %v2423_v41  ;;  %v3792_v41 = vunpack.c.l.bf16 %v2419_v34  ;;  %v48_v34 = vld [vmem:[%s4456_s2] sm:$0xff] }
 0x406   :  { %v994_v12 = vpop.xlane.xlu0 %993  ;;  %v1040_v11 = vsel %vm408_vm6, %v1030_v52, %v1039_v49  ;;  %2774 = vmatprep.subr.mxu1 %v4555_v60  ;;  %v3706_v49 = vunpack.c.l.bf16 %v2430_v26  ;;  %2741 = vmatprep.subr.mxu0 %v4555_v60  ;;  %v2422_v52 = vld [vmem:[%s4454_s7 + $0x20] sm:$0xff]   ;;  %v3794_v26 = vunpack.c.l.bf16 %v2426_v36 }
 0x407   :  { %v1034_v7 = vrot.slane %v994_v12, %v3407_v6  ;;  %2775 = vmatpush3.msra.mxu1 %v3698_v44  ;;  %4558 = vst [vmem:[#allocation18_spill] sm:$0xff] %v3704_v47  ;;  %v2429_v12 = vld [vmem:[%s4455_s8 + $0x20] sm:$0xff]   ;;  %2742 = vmatpush3.msra.mxu0 %v3704_v47  ;;  %4566 = vst [vmem:[#allocation26_spill] sm:$0xff] %v3792_v41 }
 0x408   :  { %2776 = vmatprep.subr.mxu1 %v4555_v60  ;;  %2743 = vmatprep.subr.mxu0 %v4555_v60 }
 0x409   :  { %v1041_v16 = vsel %vm410_vm7, %v1034_v7, %v1040_v11  ;;  %2777 = vmatpush3.msra.mxu1 %v3706_v49  ;;  %v3718_v7 = vunpack.c.h.bf16 %v2422_v52  ;;  %v3720_v11 = vunpack.c.h.bf16 %v2429_v12 }
 0x40a   :  { %v1043_v19 = vsel %vm240_vm8, %v1041_v16, -1e+30  ;;  %2778 = vmatprep.subr.mxu1 %v4555_v60  ;;  %v3726_v16 = vunpack.c.l.bf16 %v2422_v52  ;;  %v2324_v52 = vld [vmem:[%s4454_s7] sm:$0xff]  }
 0x40b   :  { %v1044_v24 = vsel %vm414_vm9, %v1043_v19, -inf  ;;  %4559 = vst [vmem:[#allocation19_spill] sm:$0xff] %v3718_v7  ;;  %2744 = vmatpush3.msra.mxu0 %v3718_v7  ;;  %2779 = vmatpush3.msra.mxu1 %v3720_v11 }
 0x40c   :  { %1045 = vmax.xlane.f32.xlu1 %v1044_v24  ;;  %4560 = vst [vmem:[#allocation20_spill] sm:$0xff] %v3726_v16  ;;  %2745 = vmatprep.subr.mxu0 %v4555_v60  ;;  %v2421_v24 = vld [vmem:[%s4454_s7 + $0x18] sm:$0xff]  }
 0x40d   :  { %2780 = vmatprep.subr.mxu1 %v4555_v60  ;;  %2746 = vmatpush3.msra.mxu0 %v3726_v16 }
 0x40e   :  { %2747 = vmatprep.subr.mxu0 %v4555_v60 }
 0x428   :  { %v647_v5 = vpop.f32.mrf.mxu1 }
 0x429   :  { %v648_v32 = vadd.f32 %v3635_v25, %v647_v5  ;;  %v2428_v5 = vld [vmem:[%s4455_s8 + $0x18] sm:$0xff]  }
 0x42a   :  { %v2730_v42 = vpop.f32.mrf.mxu1 }
 0x42b   :  { %v651_v35 = vsel %vm241_vm10, %v648_v32, -1e+30  ;;  %v3740_v32 = vunpack.c.h.bf16 %v2421_v24  ;;  %v3742_v42 = vunpack.c.h.bf16 %v2428_v5 }
 0x42c   :  { %652 = vmax.xlane.f32.xlu0 %v651_v35 }
 0x42d   :  { %4561 = vst [vmem:[#allocation21_spill] sm:$0xff] %v3740_v32  ;;  %2748 = vmatpush3.msra.mxu0 %v3740_v32 }
 0x42e   :  { %2749 = vmatprep.subr.mxu0 %v4555_v60 }
 0x495   :  { %v1046_v56 = vpop.xlane.xlu1 %1045 }
 0x496   :  { %v1047_v59 = vsub.f32 %v1043_v19, %v1046_v56  ;;  %v3728_v19 = vunpack.c.l.bf16 %v2429_v12  ;;  %v3750_v56 = vunpack.c.l.bf16 %v2428_v5  ;;  %v2356_v12 = vld [vmem:[%s4455_s8] sm:$0xff]  }
 0x497   :  { %v3808_v5 = vunpack.c.h.bf16 %v2356_v12 }
 0x498   :  { %v1048_v28 = vmul.f32 1.442695, %v1047_v59  ;;  %2781 = vmatpush3.msra.mxu1 %v3728_v19  ;;  %v2420_v59 = vld [vmem:[%s4454_s7 + $0x10] sm:$0xff]  }
 0x499   :  { %2782 = vmatprep.subr.mxu1 %v4555_v60 }
 0x49a   :  { %3137 = vpow2.f32 %v1048_v28  ;;  %2783 = vmatpush3.msra.mxu1 %v3742_v42  ;;  %v2427_v28 = vld [vmem:[%s4455_s8 + $0x10] sm:$0xff]  }
 0x49b   :  { %2784 = vmatprep.subr.mxu1 %v4555_v60 }
 0x49c   :  { %2785 = vmatpush3.msra.mxu1 %v3750_v56 }
 0x49d   :  { %2786 = vmatprep.subr.mxu1 %v4555_v60 }
 0x4a7   :  { %v3641_v46 = vpop.eup %3137 }
 0x4a8   :  { %v1050_v29 = vsel %vm414_vm9, %v3641_v46, 0.0 }
 0x4a9   :  { %1051 = vadd.xlane.f32.xlu1 %v1050_v29  ;;  %v3762_v29 = vunpack.c.h.bf16 %v2420_v59 }
 0x4ab   :  { %4563 = vst [vmem:[#allocation23_spill] sm:$0xff] %v3762_v29 }
 0x4b5   :  { %v653_v31 = vpop.xlane.xlu0 %652 }
 0x4b6   :  { %v654_v54 = vsub.f32 %v651_v35, %v653_v31  ;;  %v3748_v35 = vunpack.c.l.bf16 %v2421_v24  ;;  %v3764_v31 = vunpack.c.h.bf16 %v2427_v28  ;;  %v3806_v24 = vunpack.c.h.bf16 %v2324_v52 }
 0x4b8   :  { %v655_v33 = vmul.f32 1.442695, %v654_v54  ;;  %4562 = vst [vmem:[#allocation22_spill] sm:$0xff] %v3748_v35  ;;  %2750 = vmatpush3.msra.mxu0 %v3748_v35  ;;  %2787 = vmatpush3.msra.mxu1 %v3764_v31  ;;  %v3770_v54 = vunpack.c.l.bf16 %v2420_v59  ;;  %4567 = vst [vmem:[#allocation27_spill] sm:$0xff] %v3806_v24  ;;  %v3814_v59 = vunpack.c.l.bf16 %v2324_v52 }
 0x4b9   :  { %2751 = vmatprep.subr.mxu0 %v4555_v60  ;;  %2788 = vmatprep.subr.mxu1 %v4555_v60 }
 0x4ba   :  { %3139 = vpow2.f32 %v655_v33  ;;  %2752 = vmatpush3.msra.mxu0 %v3762_v29  ;;  %4564 = vst [vmem:[#allocation24_spill] sm:$0xff] %v3770_v54  ;;  %v3772_v33 = vunpack.c.l.bf16 %v2427_v28  ;;  %4568 = vst [vmem:[#allocation28_spill] sm:$0xff] %v3814_v59  ;;  %v3816_v28 = vunpack.c.l.bf16 %v2356_v12 }
 0x4bb   :  { %2753 = vmatprep.subr.mxu0 %v4555_v60 }
 0x4bc   :  { %2754 = vmatpush3.msra.mxu0 %v3770_v54  ;;  %2789 = vmatpush3.msra.mxu1 %v3772_v33 }
 0x4bd   :  { %2755 = vmatprep.subr.mxu0 %v4555_v60  ;;  %2790 = vmatprep.subr.mxu1 %v4555_v60 }
 0x4be   :  { %2756 = vmatpush3.msra.mxu0 %v3784_v23  ;;  %2791 = vmatpush3.msra.mxu1 %v3786_v38 }
 0x4bf   :  { %2757 = vmatprep.subr.mxu0 %v4555_v60  ;;  %2792 = vmatprep.subr.mxu1 %v4555_v60 }
 0x4c0   :  { %2758 = vmatpush3.msra.mxu0 %v3792_v41  ;;  %2793 = vmatpush3.msra.mxu1 %v3794_v26 }
 0x4c1   :  { %2759 = vmatprep.subr.mxu0 %v4555_v60  ;;  %2794 = vmatprep.subr.mxu1 %v4555_v60 }
 0x4c2   :  { %2760 = vmatpush3.msra.mxu0 %v3806_v24  ;;  %2795 = vmatpush3.msra.mxu1 %v3808_v5 }
 0x4c3   :  { %2761 = vmatprep.subr.mxu0 %v4555_v60  ;;  %2796 = vmatprep.subr.mxu1 %v4555_v60 }
 0x4c4   :  { %2762 = vmatpush3.msra.mxu0 %v3814_v59  ;;  %2797 = vmatpush3.msra.mxu1 %v3816_v28 }
 0x4c5   :  { %2764 = vmatmul.mubr.f32.vlgmr.msra.gmra.mxu0 %v48_v34  ;;  %2836 = vmatprep.subr.mxu1 %v4555_v60 }
 0x4c6   :  { %2801 = vmatprep.subr.mxu0 %v4555_v60  ;;  %2833 = vmatprep.mubr.msk.f32.mxu0 %vm3174_vm0, %v4555_v60 }
 0x4c7   :  { %v3645_v39 = vpop.eup %3139 }
 0x4c8   :  { %657 = vadd.xlane.f32.xlu0 %v3645_v39 }
 0x532   :  { %v1052_v36 = vpop.xlane.xlu1 %1051 }
 0x533   :  { %3141 = vrcp.f32 %v1052_v36 }
 0x540   :  { %v3142_v52 = vpop.eup %3141 }
 0x541   :  { %v1054_v12 = vmul.f32 %v3142_v52, %v1052_v36 }
 0x543   :  { %v1055_v25 = vsub.f32 2.0, %v1054_v12 }
 0x545   :  { %v1056_v4 = vmul.f32 %v3142_v52, %v1055_v25 }
 0x547   :  { %v1057_v6 = vmul.f32 %v3641_v46, %v1056_v4 }
 0x549   :  { %2308 = vst.msk [vmem:[%s4452_s11 + $0x8] sm:$0xff] %vm414_vm9, %v1057_v6  ;;  %v1063_v34 = vrot.slane %v1057_v6, %v3340_v30  ;;  %v1070_v59 = vrot.slane %v1057_v6, %v3456_v53  ;;  %v1077_v24 = vrot.slane %v1057_v6, %v3479_v62  ;;  %v1098_v41 = vrot.slane %v1057_v6, %v3516_v13  ;;  %v3996_v62 = vld [vmem:[%s4450_s0 + $0x28] sm:$0xff] }
 0x54a   :  { %v1084_v4 = vrot.slane %v1057_v6, %v3500_v8  ;;  %v1112_v46 = vrot.slane %v1057_v6, %v3533_v17  ;;  %v1091_v36 = vrot.slane %v1057_v6, %v3482_v63  ;;  %v1105_v52 = vrot.slane %v1057_v6, %v3503_v9  ;;  %v2439_v6 = vld [vmem:[%s4458_s9 + $0x38] sm:$0xff]   ;;  %v3990_v63 = vld [vmem:[%s4450_s0 + $0x10] sm:$0xff] }
 0x54b   :  { %1065 = vbcast.lane.b32.xlu1 %v1063_v34, 256  ;;  %1072 = vbcast.lane.b32.xlu0 %v1070_v59, 256 }
 0x54f   :  { %1079 = vbcast.lane.b32.xlu1 %v1077_v24, 256  ;;  %1100 = vbcast.lane.b32.xlu0 %v1098_v41, 256 }
 0x551   :  { %v658_v25 = vpop.xlane.xlu0 %657 }
 0x552   :  { %3143 = vrcp.f32 %v658_v25 }
 0x553   :  { %1086 = vbcast.lane.b32.xlu1 %v1084_v4, 256  ;;  %1114 = vbcast.lane.b32.xlu0 %v1112_v46, 256  ;;  %v4580_v4 = vld [vmem:[#allocation15_spill] sm:$0xff] }
 0x557   :  { %1093 = vbcast.lane.b32.xlu1 %v1091_v36, 256 }
 0x55b   :  { %1107 = vbcast.lane.b32.xlu1 %v1105_v52, 256  ;;  %v2434_v52 = vld [vmem:[%s4458_s9 + $0x10] sm:$0xff]  }
 0x55f   :  { %v3144_v59 = vpop.eup %3143  ;;  %1564 = vrot.lane.b32.xlu1 %v3330_v20, %s3177_s14 }
 0x560   :  { %v660_v12 = vmul.f32 %v3144_v59, %v658_v25  ;;  %v2435_v25 = vld [vmem:[%s4458_s9 + $0x18] sm:$0xff]  }
 0x561   :  { %v3929_v36 = vunpack.c.h.bf16 %v2435_v25 }
 0x562   :  { %v661_v41 = vsub.f32 2.0, %v660_v12  ;;  %v3940_v12 = vunpack.c.h.bf16 %v2434_v52 }
 0x563   :  { %4582 = vst [vmem:[#allocation34_spill] sm:$0xff] %v3929_v36 }
 0x564   :  { %v662_v24 = vmul.f32 %v3144_v59, %v661_v41  ;;  %v3936_v59 = vunpack.c.l.bf16 %v2435_v25  ;;  %4584 = vst [vmem:[#allocation36_spill] sm:$0xff] %v3940_v12  ;;  %v2433_v41 = vld [vmem:[%s4458_s9 + $0x8] sm:$0xff]  }
 0x566   :  { %v3844_v34 = vmul.f32 %v3645_v39, %v662_v24  ;;  %4583 = vst [vmem:[#allocation35_spill] sm:$0xff] %v3936_v59  ;;  %v3947_v24 = vunpack.c.l.bf16 %v2434_v52  ;;  %v3978_v52 = vld [vmem:[%s4450_s0] sm:$0xff] }
 0x568   :  { %4569 = vst [vmem:[#allocation29_spill] sm:$0xff] %v3844_v34  ;;  %664 = vst [vmem:[%s4457_s12] sm:$0xff] %v3844_v34  ;;  %2799 = vmatmul.mubr.f32.vlgmr.msra.gmra.mxu1 %v3844_v34 }
 0x569   :  { %2837 = vmatpush3.msra.mxu1 %v3432_v43  ;;  %2868 = vmatprep.mubr.msk.f32.mxu1 %vm3174_vm0, %v4555_v60  ;;  %v2438_v43 = vld [vmem:[%s4458_s9 + $0x30] sm:$0xff]   ;;  %4585 = vst [vmem:[#allocation37_spill] sm:$0xff] %v3947_v24 }
 0x56a   :  { %2838 = vmatprep.subr.mxu1 %v4555_v60 }
 0x56b   :  { %2839 = vmatpush3.msra.mxu1 %v3439_v45  ;;  %v3878_v45 = vunpack.c.h.bf16 %v2439_v6 }
 0x56c   :  { %2840 = vmatprep.subr.mxu1 %v4555_v60 }
 0x56d   :  { %2841 = vmatpush3.msra.mxu1 %v3446_v48  ;;  %4570 = vst [vmem:[#allocation30_spill] sm:$0xff] %v3878_v45  ;;  %v3880_v48 = vunpack.c.l.bf16 %v2439_v6  ;;  %2802 = vmatpush3.msra.mxu0 %v3878_v45  ;;  %v3951_v6 = vunpack.c.h.bf16 %v2433_v41 }
 0x56e   :  { %2842 = vmatprep.subr.mxu1 %v4555_v60  ;;  %2803 = vmatprep.subr.mxu0 %v4555_v60 }
 0x56f   :  { %2843 = vmatpush3.msra.mxu1 %v3453_v51  ;;  %4571 = vst [vmem:[#allocation31_spill] sm:$0xff] %v3880_v48  ;;  %v3885_v51 = vunpack.c.h.bf16 %v2438_v43  ;;  %2804 = vmatpush3.msra.mxu0 %v3880_v48  ;;  %4586 = vst [vmem:[#allocation38_spill] sm:$0xff] %v3951_v6 }
 0x570   :  { %2844 = vmatprep.subr.mxu1 %v4555_v60  ;;  %2805 = vmatprep.subr.mxu0 %v4555_v60 }
 0x571   :  { %2845 = vmatpush3.msra.mxu1 %v3463_v55  ;;  %4572 = vst [vmem:[#allocation32_spill] sm:$0xff] %v3885_v51  ;;  %v2437_v55 = vld [vmem:[%s4458_s9 + $0x28] sm:$0xff]   ;;  %2806 = vmatpush3.msra.mxu0 %v3885_v51 }
 0x572   :  { %2846 = vmatprep.subr.mxu1 %v4555_v60  ;;  %2807 = vmatprep.subr.mxu0 %v4555_v60 }
 0x573   :  { %2847 = vmatpush3.msra.mxu1 %v3470_v57  ;;  %v3894_v57 = vunpack.c.l.bf16 %v2438_v43  ;;  %v3955_v43 = vunpack.c.l.bf16 %v2433_v41 }
 0x574   :  { %2848 = vmatprep.subr.mxu1 %v4555_v60 }
 0x575   :  { %2849 = vmatpush3.msra.mxu1 %v3489_v2  ;;  %4573 = vst [vmem:[#allocation33_spill] sm:$0xff] %v3894_v57  ;;  %v4574_v2 = vld [vmem:[#allocation12_spill] sm:$0xff]  ;;  %2808 = vmatpush3.msra.mxu0 %v3894_v57  ;;  %4587 = vst [vmem:[#allocation39_spill] sm:$0xff] %v3955_v43 }
 0x576   :  { %2850 = vmatprep.subr.mxu1 %v4555_v60  ;;  %2809 = vmatprep.subr.mxu0 %v4555_v60 }
 0x577   :  { %2851 = vmatpush3.msra.mxu1 %v3495_v3  ;;  %v3900_v3 = vunpack.c.h.bf16 %v2437_v55 }
 0x578   :  { %2852 = vmatprep.subr.mxu1 %v4555_v60 }
 0x579   :  { %2853 = vmatpush3.msra.mxu1 %v3510_v10  ;;  %4575 = vst [vmem:[#allocation12_spill] sm:$0xff] %v3900_v3  ;;  %v2436_v10 = vld [vmem:[%s4458_s9 + $0x20] sm:$0xff]   ;;  %2810 = vmatpush3.msra.mxu0 %v3900_v3 }
 0x57a   :  { %2854 = vmatprep.subr.mxu1 %v4555_v60  ;;  %v3915_v39 = vunpack.c.h.bf16 %v2436_v10  ;;  %2811 = vmatprep.subr.mxu0 %v4555_v60  ;;  %v3924_v46 = vunpack.c.l.bf16 %v2436_v10 }
 0x57b   :  { %2855 = vmatpush3.msra.mxu1 %v3522_v14  ;;  %v4576_v14 = vld [vmem:[#allocation13_spill] sm:$0xff] }
 0x57c   :  { %2856 = vmatprep.subr.mxu1 %v4555_v60  ;;  %4581 = vst [vmem:[#allocation15_spill] sm:$0xff] %v3924_v46 }
 0x57d   :  { %2857 = vmatpush3.msra.mxu1 %v3528_v15  ;;  %v3909_v15 = vunpack.c.l.bf16 %v2437_v55  ;;  %v2388_v55 = vld [vmem:[%s4458_s9] sm:$0xff]  }
 0x57e   :  { %2858 = vmatprep.subr.mxu1 %v4555_v60 }
 0x57f   :  { %2859 = vmatpush3.msra.mxu1 %v3540_v18  ;;  %4577 = vst [vmem:[#allocation13_spill] sm:$0xff] %v3909_v15  ;;  %v4578_v18 = vld [vmem:[#allocation14_spill] sm:$0xff]  ;;  %2812 = vmatpush3.msra.mxu0 %v3909_v15 }
 0x580   :  { %2860 = vmatprep.subr.mxu1 %v4555_v60  ;;  %4579 = vst [vmem:[#allocation14_spill] sm:$0xff] %v3915_v39  ;;  %2813 = vmatprep.subr.mxu0 %v4555_v60 }
 0x581   :  { %2861 = vmatpush3.msra.mxu1 %v4574_v2  ;;  %2814 = vmatpush3.msra.mxu0 %v3915_v39  ;;  %v3965_v2 = vunpack.c.h.bf16 %v2388_v55 }
 0x582   :  { %2862 = vmatprep.subr.mxu1 %v4555_v60  ;;  %2815 = vmatprep.subr.mxu0 %v4555_v60 }
 0x583   :  { %2863 = vmatpush3.msra.mxu1 %v4576_v14  ;;  %2816 = vmatpush3.msra.mxu0 %v3924_v46  ;;  %4588 = vst [vmem:[#allocation40_spill] sm:$0xff] %v3965_v2  ;;  %v3970_v14 = vunpack.c.l.bf16 %v2388_v55  ;;  %v3984_v55 = vld [vmem:[%s4450_s0 + $0x8] sm:$0xff] }
 0x584   :  { %2864 = vmatprep.subr.mxu1 %v4555_v60  ;;  %2817 = vmatprep.subr.mxu0 %v4555_v60 }
 0x585   :  { %2865 = vmatpush3.msra.mxu1 %v4578_v18  ;;  %2818 = vmatpush3.msra.mxu0 %v3929_v36  ;;  %v3967_v10 = vpop.f32.mrf.mxu0  ;;  %4589 = vst [vmem:[#allocation41_spill] sm:$0xff] %v3970_v14 }
 0x586   :  { %2866 = vmatprep.subr.mxu1 %v4555_v60  ;;  %2819 = vmatprep.subr.mxu0 %v4555_v60 }
 0x587   :  { %2867 = vmatpush3.msra.mxu1 %v4580_v4  ;;  %2820 = vmatpush3.msra.mxu0 %v3936_v59  ;;  %v2765_v18 = vpop.f32.mrf.mxu0 }
 0x588   :  { %2906 = vmatprep.subr.mxu1 %v4555_v60  ;;  %2821 = vmatprep.subr.mxu0 %v4555_v60 }
 0x589   :  { %2822 = vmatpush3.msra.mxu0 %v3940_v12 }
 0x58a   :  { %2823 = vmatprep.subr.mxu0 %v4555_v60 }
 0x58b   :  { %2824 = vmatpush3.msra.mxu0 %v3947_v24 }
 0x58c   :  { %2825 = vmatprep.subr.mxu0 %v4555_v60 }
 0x58d   :  { %2826 = vmatpush3.msra.mxu0 %v3951_v6  ;;  %v4008_v6 = vld [vmem:[%s4450_s0 + $0x38] sm:$0xff] }
 0x58e   :  { %2827 = vmatprep.subr.mxu0 %v4555_v60 }
 0x58f   :  { %2828 = vmatpush3.msra.mxu0 %v3955_v43 }
 0x590   :  { %2829 = vmatprep.subr.mxu0 %v4555_v60 }
 0x591   :  { %2830 = vmatpush3.msra.mxu0 %v3965_v2 }
 0x592   :  { %2831 = vmatprep.subr.mxu0 %v4555_v60 }
 0x593   :  { %2832 = vmatpush3.msra.mxu0 %v3970_v14 }
 0x594   :  { %2871 = vmatprep.subr.mxu0 %v4555_v60 }
 0x5bd   :  { %v1066_v25 = vpop.permute.xlu1 %1065  ;;  %v1073_v4 = vpop.permute.xlu0 %1072 }
 0x5be   :  { %v1116_v41 = vmul.f32 %v3978_v52, %v1066_v25  ;;  %v1117_v20 = vmul.f32 %v3984_v55, %v1073_v4 }
 0x5c0   :  { %v1124_v34 = vrot.slane %v1116_v41, 4  ;;  %v1130_v18 = vrot.slane %v1117_v20, 4 }
 0x5c1   :  { %v1080_v17 = vpop.permute.xlu1 %1079  ;;  %v1101_v13 = vpop.permute.xlu0 %1100 }
 0x5c2   :  { %v1125_v9 = vadd.f32 %v1124_v34, %v1116_v41  ;;  %v1131_v8 = vadd.f32 %v1130_v18, %v1117_v20  ;;  %v1118_v25 = vmul.f32 %v3990_v63, %v1080_v17  ;;  %v1121_v4 = vmul.f32 %v3996_v62, %v1101_v13  ;;  %v4002_v18 = vld [vmem:[%s4450_s0 + $0x18] sm:$0xff] }
 0x5c4   :  { %v1136_v53 = vrot.slane %v1118_v25, 4  ;;  %v1154_v14 = vrot.slane %v1121_v4, 4  ;;  %v1126_v34 = vrot.slane %v1125_v9, 2  ;;  %v1132_v20 = vrot.slane %v1131_v8, 2 }
 0x5c5   :  { %v1087_v2 = vpop.permute.xlu1 %1086  ;;  %v1115_v43 = vpop.permute.xlu0 %1114 }
 0x5c6   :  { %v1137_v41 = vadd.f32 %v1136_v53, %v1118_v25  ;;  %v1119_v17 = vmul.f32 %v4002_v18, %v1087_v2  ;;  %v1123_v13 = vmul.f32 %v4008_v6, %v1115_v43  ;;  %v1155_v12 = vadd.f32 %v1154_v14, %v1121_v4  ;;  %v4014_v2 = vld [vmem:[%s4450_s0 + $0x20] sm:$0xff] }
 0x5c7   :  { %v1127_v53 = vadd.f32 %v1126_v34, %v1125_v9  ;;  %v1133_v25 = vadd.f32 %v1132_v20, %v1131_v8  ;;  %v4020_v8 = vld [vmem:[%s4450_s0 + $0x30] sm:$0xff] }
 0x5c8   :  { %v1138_v24 = vrot.slane %v1137_v41, 2  ;;  %v1142_v59 = vrot.slane %v1119_v17, 4  ;;  %v1166_v36 = vrot.slane %v1123_v13, 4  ;;  %v1156_v51 = vrot.slane %v1155_v12, 2 }
 0x5c9   :  { %v1094_v46 = vpop.permute.xlu1 %1093  ;;  %v1128_v14 = vrot.slane %v1127_v53, 1  ;;  %v1134_v4 = vrot.slane %v1133_v25, 1 }
 0x5ca   :  { %v1139_v39 = vadd.f32 %v1138_v24, %v1137_v41  ;;  %v1143_v15 = vadd.f32 %v1142_v59, %v1119_v17  ;;  %v1167_v3 = vadd.f32 %v1166_v36, %v1123_v13  ;;  %v1120_v57 = vmul.f32 %v4014_v2, %v1094_v46 }
 0x5cb   :  { %v1157_v41 = vadd.f32 %v1156_v51, %v1155_v12  ;;  %v1129_v23 = vadd.f32 %v1128_v14, %v1127_v53  ;;  %v1135_v54 = vadd.f32 %v1134_v4, %v1133_v25 }
 0x5cc   :  { %v1144_v48 = vrot.slane %v1143_v15, 2  ;;  %v1148_v43 = vrot.slane %v1120_v57, 4  ;;  %v1140_v36 = vrot.slane %v1139_v39, 1  ;;  %v1168_v24 = vrot.slane %v1167_v3, 2 }
 0x5cd   :  { %v1108_v45 = vpop.permute.xlu1 %1107  ;;  %v1158_v21 = vrot.slane %v1157_v41, 1 }
 0x5ce   :  { %v1122_v9 = vmul.f32 %v4020_v8, %v1108_v45  ;;  %v1145_v59 = vadd.f32 %v1144_v48, %v1143_v15  ;;  %v1149_v34 = vadd.f32 %v1148_v43, %v1120_v57  ;;  %v1141_v35 = vadd.f32 %v1140_v36, %v1139_v39 }
 0x5cf   :  { %v1169_v32 = vadd.f32 %v1168_v24, %v1167_v3  ;;  %v1203_v48 = vsel %vm398_vm1, %v1135_v54, %v1129_v23  ;;  %v1159_v25 = vadd.f32 %v1158_v21, %v1157_v41 }
 0x5d0   :  { %v1160_v20 = vrot.slane %v1122_v9, 4  ;;  %v1146_v46 = vrot.slane %v1145_v59, 1  ;;  %v1150_v17 = vrot.slane %v1149_v34, 2  ;;  %v1204_v57 = vsel %vm400_vm2, %v1141_v35, %v1203_v48 }
 0x5d1   :  { %v1565_v13 = vpop.permute.xlu1 %1564  ;;  %v1170_v51 = vrot.slane %v1169_v32, 1 }
 0x5d2   :  { %v1161_v29 = vadd.f32 %v1160_v20, %v1122_v9  ;;  %3145 = vtanh.f32 %v1565_v13  ;;  %v1151_v16 = vadd.f32 %v1150_v17, %v1149_v34  ;;  %v1147_v7 = vadd.f32 %v1146_v46, %v1145_v59 }
 0x5d3   :  { %v1171_v3 = vadd.f32 %v1170_v51, %v1169_v32 }
 0x5d4   :  { %v1162_v47 = vrot.slane %v1161_v29, 2  ;;  %v1152_v45 = vrot.slane %v1151_v16, 1  ;;  %v1205_v43 = vsel %vm402_vm3, %v1147_v7, %v1204_v57 }
 0x5d6   :  { %v1163_v15 = vadd.f32 %v1162_v47, %v1161_v29  ;;  %v1153_v12 = vadd.f32 %v1152_v45, %v1151_v16 }
 0x5d8   :  { %v1164_v53 = vrot.slane %v1163_v15, 1  ;;  %v1206_v14 = vsel %vm404_vm4, %v1153_v12, %v1205_v43 }
 0x5d9   :  { %v1207_v4 = vsel %vm406_vm5, %v1159_v25, %v1206_v14 }
 0x5da   :  { %v1165_v39 = vadd.f32 %v1164_v53, %v1163_v15 }
 0x5dc   :  { %v1208_v9 = vsel %vm408_vm6, %v1165_v39, %v1207_v4 }
 0x5dd   :  { %v1209_v36 = vsel %vm410_vm7, %v1171_v3, %v1208_v9 }
 0x5de   :  { %2869 = vmatmul.mubr.f32.vlgmr.msra.gmra.mxu1 %v1209_v36 }
 0x5df   :  { %v3146_v47 = vpop.eup %3145  ;;  %2907 = vmatpush3.msra.mxu1 %v3656_v61  ;;  %2938 = vmatprep.mubr.msk.f32.mxu1 %vm3174_vm0, %v4555_v60 }
 0x5e0   :  { %v1575_v7 = vrot.slane %v3146_v47, %v3336_v27  ;;  %v1568_v21 = vcombine.high %v3146_v47, %v3146_v47  ;;  %2908 = vmatprep.subr.mxu1 %v4555_v60  ;;  %v4591_v47 = vld [vmem:[#allocation18_spill] sm:$0xff] }
 0x5e1   :  { %2909 = vmatpush3.msra.mxu1 %v3660_v50 }
 0x5e2   :  { %v1591_v16 = vrot.slane %v1575_v7, %v3336_v27  ;;  %v1583_v32 = vcombine.high %v1575_v7, %v1575_v7  ;;  %v1582_v35 = vrot.slane %v1568_v21, %v3336_v27  ;;  %2910 = vmatprep.subr.mxu1 %v4555_v60  ;;  %v4592_v7 = vld [vmem:[#allocation19_spill] sm:$0xff]  ;;  %v4593_v21 = vld [vmem:[#allocation20_spill] sm:$0xff] }
 0x5e3   :  { %2911 = vmatpush3.msra.mxu1 %v3676_v58 }
 0x5e4   :  { %v1620_v29 = vrot.slane %v1591_v16, %v3340_v30  ;;  %v1605_v54 = vrot.slane %v1583_v32, %v3336_v27  ;;  %v1613_v23 = vcombine.high %v1591_v16, %v1591_v16  ;;  %v1584_v59 = vcombine.high %v1582_v35, %v1582_v35  ;;  %2912 = vmatprep.subr.mxu1 %v4555_v60  ;;  %v4594_v16 = vld [vmem:[#allocation21_spill] sm:$0xff]  ;;  %v4595_v32 = vld [vmem:[#allocation22_spill] sm:$0xff] }
 0x5e5   :  { %2913 = vmatpush3.msra.mxu1 %v3680_v1  ;;  %v1598_v57 = vrot.slane %v1582_v35, %v3336_v27  ;;  %v4596_v35 = vld [vmem:[#allocation23_spill] sm:$0xff] }
 0x5e6   :  { %v1657_v24 = vmul.f32 %v3978_v52, %v1620_v29  ;;  %v1624_v34 = vrot.slane %v1605_v54, %v3340_v30  ;;  %v1628_v20 = vrot.slane %v1613_v23, %v3340_v30  ;;  %v1612_v41 = vrot.slane %v1584_v59, %v3336_v27  ;;  %2914 = vmatprep.subr.mxu1 %v4555_v60  ;;  %v4597_v29 = vld [vmem:[#allocation24_spill] sm:$0xff]  ;;  %v4599_v23 = vld [vmem:[#allocation26_spill] sm:$0xff]  ;;  %v4600_v59 = vld [vmem:[#allocation27_spill] sm:$0xff] }
 0x5e7   :  { %v1615_v46 = vcombine.high %v1605_v54, %v1605_v54  ;;  %2915 = vmatpush3.msra.mxu1 %v3698_v44  ;;  %v1636_v53 = vrot.slane %v1598_v57, %v3340_v30  ;;  %v1614_v25 = vcombine.high %v1598_v57, %v1598_v57  ;;  %v4598_v54 = vld [vmem:[#allocation25_spill] sm:$0xff] }
 0x5e8   :  { %1665 = vadd.xlane.f32.xlu0 %v1657_v24  ;;  %v1658_v17 = vmul.f32 %v3984_v55, %v1624_v34  ;;  %v1640_v13 = vrot.slane %v1612_v41, %v3340_v30  ;;  %v1616_v45 = vcombine.high %v1612_v41, %v1612_v41  ;;  %2916 = vmatprep.subr.mxu1 %v4555_v60  ;;  %v4601_v24 = vld [vmem:[#allocation28_spill] sm:$0xff] }
 0x5e9   :  { %v1659_v48 = vmul.f32 %v3990_v63, %v1628_v20  ;;  %v1632_v15 = vrot.slane %v1615_v46, %v3340_v30  ;;  %2917 = vmatpush3.msra.mxu1 %v3706_v49  ;;  %v1661_v14 = vmul.f32 %v4014_v2, %v1636_v53  ;;  %v1644_v39 = vrot.slane %v1614_v25, %v3340_v30  ;;  %v4602_v46 = vld [vmem:[#allocation4_spill] sm:$0xff] }
 0x5ea   :  { %1667 = vadd.xlane.f32.xlu1 %v1658_v17  ;;  %2918 = vmatprep.subr.mxu1 %v4555_v60  ;;  %v1662_v51 = vmul.f32 %v3996_v62, %v1640_v13  ;;  %v1648_v12 = vrot.slane %v1616_v45, %v3340_v30 }
 0x5eb   :  { %2919 = vmatpush3.msra.mxu1 %v3720_v11  ;;  %v1660_v43 = vmul.f32 %v4002_v18, %v1632_v15  ;;  %v1663_v3 = vmul.f32 %v4020_v8, %v1644_v39 }
 0x5ec   :  { %1669 = vadd.xlane.f32.xlu0 %v1659_v48  ;;  %2920 = vmatprep.subr.mxu1 %v4555_v60  ;;  %v1664_v27 = vmul.f32 %v4008_v6, %v1648_v12 }
 0x5ed   :  { %2921 = vmatpush3.msra.mxu1 %v3728_v19 }
 0x5ee   :  { %1675 = vadd.xlane.f32.xlu1 %v1662_v51  ;;  %2922 = vmatprep.subr.mxu1 %v4555_v60 }
 0x5ef   :  { %2923 = vmatpush3.msra.mxu1 %v3742_v42 }
 0x5f0   :  { %1671 = vadd.xlane.f32.xlu0 %v1660_v43  ;;  %2924 = vmatprep.subr.mxu1 %v4555_v60 }
 0x5f1   :  { %2925 = vmatpush3.msra.mxu1 %v3750_v56 }
 0x5f2   :  { %1679 = vadd.xlane.f32.xlu1 %v1664_v27  ;;  %2926 = vmatprep.subr.mxu1 %v4555_v60 }
 0x5f3   :  { %2927 = vmatpush3.msra.mxu1 %v3764_v31 }
 0x5f4   :  { %1673 = vadd.xlane.f32.xlu0 %v1661_v14  ;;  %2928 = vmatprep.subr.mxu1 %v4555_v60 }
 0x5f5   :  { %2929 = vmatpush3.msra.mxu1 %v3772_v33 }
 0x5f6   :  { %2930 = vmatprep.subr.mxu1 %v4555_v60 }
 0x5f7   :  { %2931 = vmatpush3.msra.mxu1 %v3786_v38 }
 0x5f8   :  { %1677 = vadd.xlane.f32.xlu0 %v1663_v3  ;;  %2932 = vmatprep.subr.mxu1 %v4555_v60 }
 0x5f9   :  { %2933 = vmatpush3.msra.mxu1 %v3794_v26 }
 0x5fa   :  { %2934 = vmatprep.subr.mxu1 %v4555_v60 }
 0x5fb   :  { %2935 = vmatpush3.msra.mxu1 %v3808_v5 }
 0x5fc   :  { %2936 = vmatprep.subr.mxu1 %v4555_v60 }
 0x5fd   :  { %2937 = vmatpush3.msra.mxu1 %v3816_v28 }
 0x5fe   :  { %2976 = vmatprep.subr.mxu1 %v4555_v60 }
 0x628   :  { %v801_v4 = vpop.f32.mrf.mxu1 }
 0x629   :  { %v805_v9 = vmul.f32 %v801_v4, %v3967_v10  ;;  %v4590_v10 = vld [vmem:[#allocation17_spill] sm:$0xff] }
 0x62a   :  { %v2800_v36 = vpop.f32.mrf.mxu1 }
 0x62b   :  { %2834 = vmatmul.mubr.f32.vlgmr.msra.gmra.mxu0 %v805_v9 }
 0x62c   :  { %2872 = vmatpush3.msra.mxu0 %v3654_v37  ;;  %2903 = vmatprep.mubr.msk.f32.mxu0 %vm3174_vm0, %v4555_v60 }
 0x62d   :  { %2873 = vmatprep.subr.mxu0 %v4555_v60 }
 0x62e   :  { %2874 = vmatpush3.msra.mxu0 %v3658_v0 }
 0x62f   :  { %2875 = vmatprep.subr.mxu0 %v4555_v60 }
 0x630   :  { %2876 = vmatpush3.msra.mxu0 %v3674_v22 }
 0x631   :  { %2877 = vmatprep.subr.mxu0 %v4555_v60 }
 0x632   :  { %2878 = vmatpush3.msra.mxu0 %v3678_v40 }
 0x633   :  { %2879 = vmatprep.subr.mxu0 %v4555_v60 }
 0x634   :  { %2880 = vmatpush3.msra.mxu0 %v4590_v10 }
 0x635   :  { %2881 = vmatprep.subr.mxu0 %v4555_v60 }
 0x636   :  { %2882 = vmatpush3.msra.mxu0 %v4591_v47 }
 0x637   :  { %2883 = vmatprep.subr.mxu0 %v4555_v60 }
 0x638   :  { %2884 = vmatpush3.msra.mxu0 %v4592_v7 }
 0x639   :  { %2885 = vmatprep.subr.mxu0 %v4555_v60 }
 0x63a   :  { %2886 = vmatpush3.msra.mxu0 %v4593_v21 }
 0x63b   :  { %2887 = vmatprep.subr.mxu0 %v4555_v60 }
 0x63c   :  { %2888 = vmatpush3.msra.mxu0 %v4594_v16 }
 0x63d   :  { %2889 = vmatprep.subr.mxu0 %v4555_v60 }
 0x63e   :  { %2890 = vmatpush3.msra.mxu0 %v4595_v32 }
 0x63f   :  { %2891 = vmatprep.subr.mxu0 %v4555_v60 }
 0x640   :  { %2892 = vmatpush3.msra.mxu0 %v4596_v35 }
 0x641   :  { %2893 = vmatprep.subr.mxu0 %v4555_v60 }
 0x642   :  { %2894 = vmatpush3.msra.mxu0 %v4597_v29 }
 0x643   :  { %2895 = vmatprep.subr.mxu0 %v4555_v60 }
 0x644   :  { %2896 = vmatpush3.msra.mxu0 %v4598_v54 }
 0x645   :  { %2897 = vmatprep.subr.mxu0 %v4555_v60 }
 0x646   :  { %2898 = vmatpush3.msra.mxu0 %v4599_v23 }
 0x647   :  { %2899 = vmatprep.subr.mxu0 %v4555_v60 }
 0x648   :  { %2900 = vmatpush3.msra.mxu0 %v4600_v59 }
 0x649   :  { %2901 = vmatprep.subr.mxu0 %v4555_v60 }
 0x64a   :  { %2902 = vmatpush3.msra.mxu0 %v4601_v24 }
 0x64b   :  { %2941 = vmatprep.subr.mxu0 %v4555_v60 }
 0x671   :  { %v1666_v34 = vpop.xlane.xlu0 %1665 }
 0x672   :  { %v1692_v13 = vrot.slane %v1666_v34, %v4602_v46 }
 0x673   :  { %v1668_v20 = vpop.xlane.xlu1 %1667 }
 0x674   :  { %v1696_v17 = vrot.slane %v1668_v20, %v4602_v46 }
 0x675   :  { %v1670_v41 = vpop.xlane.xlu0 %1669 }
 0x676   :  { %v1700_v48 = vrot.slane %v1670_v41, %v4602_v46  ;;  %v1721_v57 = vsel %vm398_vm1, %v1696_v17, %v1692_v13 }
 0x677   :  { %v1676_v15 = vpop.xlane.xlu1 %1675 }
 0x678   :  { %v1722_v43 = vsel %vm400_vm2, %v1700_v48, %v1721_v57  ;;  %v1712_v39 = vrot.slane %v1676_v15, %v4602_v46  ;;  %v4604_v48 = vld [vmem:[#allocation16_spill] sm:$0xff] }
 0x679   :  { %v1672_v45 = vpop.xlane.xlu0 %1671 }
 0x67a   :  { %v1704_v51 = vrot.slane %v1672_v45, %v4602_v46 }
 0x67b   :  { %v1680_v27 = vpop.xlane.xlu1 %1679 }
 0x67c   :  { %v1723_v25 = vsel %vm402_vm3, %v1704_v51, %v1722_v43  ;;  %v1720_v9 = vrot.slane %v1680_v27, %v4602_v46  ;;  %v4608_v27 = vld [vmem:[#allocation32_spill] sm:$0xff] }
 0x67d   :  { %v1674_v12 = vpop.xlane.xlu0 %1673 }
 0x67e   :  { %v1708_v53 = vrot.slane %v1674_v12, %v4602_v46 }
 0x680   :  { %v1724_v14 = vsel %vm404_vm4, %v1708_v53, %v1723_v25  ;;  %v4606_v53 = vld [vmem:[#allocation30_spill] sm:$0xff]  ;;  %v4607_v25 = vld [vmem:[#allocation31_spill] sm:$0xff] }
 0x681   :  { %v1678_v3 = vpop.xlane.xlu0 %1677  ;;  %v1725_v36 = vsel %vm406_vm5, %v1712_v39, %v1724_v14  ;;  %v4609_v14 = vld [vmem:[#allocation33_spill] sm:$0xff]  ;;  %v4610_v39 = vld [vmem:[#allocation12_spill] sm:$0xff] }
 0x682   :  { %v1716_v4 = vrot.slane %v1678_v3, %v4602_v46  ;;  %v4611_v3 = vld [vmem:[#allocation13_spill] sm:$0xff] }
 0x684   :  { %v1726_v34 = vsel %vm408_vm6, %v1716_v4, %v1725_v36  ;;  %v4612_v4 = vld [vmem:[#allocation14_spill] sm:$0xff] }
 0x685   :  { %v1727_v20 = vsel %vm410_vm7, %v1720_v9, %v1726_v34  ;;  %v4613_v9 = vld [vmem:[#allocation15_spill] sm:$0xff]  ;;  %v4614_v36 = vld [vmem:[#allocation34_spill] sm:$0xff] }
 0x686   :  { %v1729_v17 = vsel %vm240_vm8, %v1727_v20, -1e+30  ;;  %v4615_v34 = vld [vmem:[#allocation35_spill] sm:$0xff]  ;;  %v4616_v20 = vld [vmem:[#allocation36_spill] sm:$0xff] }
 0x687   :  { %v1730_v13 = vsel %vm414_vm9, %v1729_v17, -inf }
 0x688   :  { %1731 = vmax.xlane.f32.xlu0 %v1730_v13  ;;  %v4617_v13 = vld [vmem:[#allocation37_spill] sm:$0xff] }
 0x69e   :  { %v1277_v45 = vpop.f32.mrf.mxu1 }
 0x69f   :  { %v1278_v15 = vadd.f32 %v4604_v48, %v1277_v45  ;;  %v4618_v45 = vld [vmem:[#allocation38_spill] sm:$0xff]  ;;  %v4619_v48 = vld [vmem:[#allocation39_spill] sm:$0xff] }
 0x6a0   :  { %v2870_v57 = vpop.f32.mrf.mxu1 }
 0x6a1   :  { %v1281_v51 = vsel %vm241_vm10, %v1278_v15, -1e+30  ;;  %v4620_v15 = vld [vmem:[#allocation40_spill] sm:$0xff]  ;;  %v4621_v57 = vld [vmem:[#allocation41_spill] sm:$0xff] }
 0x6a2   :  { %1282 = vmax.xlane.f32.xlu1 %v1281_v51 }
 0x6eb   :  { %v872_v46 = vpop.f32.mrf.mxu0 }
 0x6ec   :  { %v4142_v12 = vmin.f32 %v872_v46, 1.0 }
 0x6ed   :  { %v2835_v43 = vpop.f32.mrf.mxu0 }
 0x6ee   :  { %4605 = vst [vmem:[#allocation17_spill] sm:$0xff] %v4142_v12  ;;  %2904 = vmatmul.mubr.f32.vlgmr.msra.gmra.mxu0 %v4142_v12  ;;  %877 = vst [vmem:[%s4459_s13] sm:$0xff] %v4142_v12 }
 0x6ef   :  { %2942 = vmatpush3.msra.mxu0 %v4606_v53  ;;  %2973 = vmatprep.mubr.msk.f32.mxu0 %vm3174_vm0, %v4555_v60 }
 0x6f0   :  { %2943 = vmatprep.subr.mxu0 %v4555_v60 }
 0x6f1   :  { %2944 = vmatpush3.msra.mxu0 %v4607_v25 }
 0x6f2   :  { %2945 = vmatprep.subr.mxu0 %v4555_v60 }
 0x6f3   :  { %2946 = vmatpush3.msra.mxu0 %v4608_v27 }
 0x6f4   :  { %2947 = vmatprep.subr.mxu0 %v4555_v60 }
 0x6f5   :  { %2948 = vmatpush3.msra.mxu0 %v4609_v14 }
 0x6f6   :  { %2949 = vmatprep.subr.mxu0 %v4555_v60 }
 0x6f7   :  { %2950 = vmatpush3.msra.mxu0 %v4610_v39  ;;  %v4628_v39 = vld [vmem:[#allocation11_spill] sm:$0xff] }
 0x6f8   :  { %2951 = vmatprep.subr.mxu0 %v4555_v60 }
 0x6f9   :  { %2952 = vmatpush3.msra.mxu0 %v4611_v3 }
 0x6fa   :  { %2953 = vmatprep.subr.mxu0 %v4555_v60 }
 0x6fb   :  { %2954 = vmatpush3.msra.mxu0 %v4612_v4 }
 0x6fc   :  { %2955 = vmatprep.subr.mxu0 %v4555_v60 }
 0x6fd   :  { %2956 = vmatpush3.msra.mxu0 %v4613_v9 }
 0x6fe   :  { %2957 = vmatprep.subr.mxu0 %v4555_v60 }
 0x6ff   :  { %2958 = vmatpush3.msra.mxu0 %v4614_v36 }
 0x700   :  { %2959 = vmatprep.subr.mxu0 %v4555_v60 }
 0x701   :  { %2960 = vmatpush3.msra.mxu0 %v4615_v34 }
 0x702   :  { %2961 = vmatprep.subr.mxu0 %v4555_v60 }
 0x703   :  { %2962 = vmatpush3.msra.mxu0 %v4616_v20 }
 0x704   :  { %2963 = vmatprep.subr.mxu0 %v4555_v60 }
 0x705   :  { %2964 = vmatpush3.msra.mxu0 %v4617_v13 }
 0x706   :  { %2965 = vmatprep.subr.mxu0 %v4555_v60 }
 0x707   :  { %2966 = vmatpush3.msra.mxu0 %v4618_v45 }
 0x708   :  { %2967 = vmatprep.subr.mxu0 %v4555_v60 }
 0x709   :  { %2968 = vmatpush3.msra.mxu0 %v4619_v48 }
 0x70a   :  { %2969 = vmatprep.subr.mxu0 %v4555_v60 }
 0x70b   :  { %2970 = vmatpush3.msra.mxu0 %v4620_v15 }
 0x70c   :  { %2971 = vmatprep.subr.mxu0 %v4555_v60 }
 0x70d   :  { %2972 = vmatpush3.msra.mxu0 %v4621_v57 }
 0x70e   :  { %3011 = vmatprep.subr.mxu0 %v4555_v60 }
 0x711   :  { %v1732_v46 = vpop.xlane.xlu0 %1731 }
 0x712   :  { %v1733_v43 = vsub.f32 %v1729_v17, %v1732_v46 }
 0x714   :  { %v1734_v12 = vmul.f32 1.442695, %v1733_v43  ;;  %v4624_v43 = vld [vmem:[#allocation7_spill] sm:$0xff] }
 0x716   :  { %3147 = vpow2.f32 %v1734_v12 }
 0x723   :  { %v3148_v13 = vpop.eup %3147 }
 0x724   :  { %v1736_v45 = vsel %vm414_vm9, %v3148_v13, 0.0 }
 0x725   :  { %1737 = vadd.xlane.f32.xlu0 %v1736_v45 }
 0x72b   :  { %v1283_v20 = vpop.xlane.xlu1 %1282 }
 0x72c   :  { %v1284_v48 = vsub.f32 %v1281_v51, %v1283_v20  ;;  %v4622_v51 = vld [vmem:[#allocation5_spill] sm:$0xff] }
 0x72e   :  { %v1285_v34 = vmul.f32 1.442695, %v1284_v48  ;;  %v4623_v48 = vld [vmem:[#allocation6_spill] sm:$0xff] }
 0x730   :  { %3149 = vpow2.f32 %v1285_v34 }
 0x73d   :  { %v3150_v36 = vpop.eup %3149 }
 0x73e   :  { %1287 = vadd.xlane.f32.xlu1 %v3150_v36 }
 0x7ae   :  { %v4184_v15 = vpop.f32.mrf.mxu0  ;;  %v1738_v9 = vpop.xlane.xlu0 %1737 }
 0x7af   :  { %3151 = vrcp.f32 %v1738_v9 }
 0x7b0   :  { %v2905_v57 = vpop.f32.mrf.mxu0 }
 0x7bc   :  { %v3152_v4 = vpop.eup %3151 }
 0x7bd   :  { %v1740_v3 = vmul.f32 %v3152_v4, %v1738_v9 }
 0x7bf   :  { %v1741_v17 = vsub.f32 2.0, %v1740_v3  ;;  %v4625_v3 = vld [vmem:[#allocation8_spill] sm:$0xff] }
 0x7c1   :  { %v1742_v46 = vmul.f32 %v3152_v4, %v1741_v17 }
 0x7c3   :  { %v1743_v12 = vmul.f32 %v3148_v13, %v1742_v46  ;;  %v4626_v13 = vld [vmem:[#allocation9_spill] sm:$0xff]  ;;  %v4627_v46 = vld [vmem:[#allocation10_spill] sm:$0xff] }
 0x7c5   :  { %2315 = vst.msk [vmem:[%s4452_s11 + $0x10] sm:$0xff] %vm414_vm9, %v1743_v12  ;;  %v1756_v20 = vrot.slane %v1743_v12, %v4622_v51  ;;  %v1749_v34 = vrot.slane %v1743_v12, %v3340_v30  ;;  %v1763_v57 = vrot.slane %v1743_v12, %v4623_v48  ;;  %v1777_v9 = vrot.slane %v1743_v12, %v4624_v43  ;;  %v1867_v43 = vld [vmem:[%s4451_s5 + $0x48] sm:$0xff] }
 0x7c6   :  { %v1770_v4 = vrot.slane %v1743_v12, %v4625_v3  ;;  %v1791_v17 = vrot.slane %v1743_v12, %v4626_v13  ;;  %v1784_v51 = vrot.slane %v1743_v12, %v4627_v46  ;;  %v1865_v3 = vld [vmem:[%s4451_s5 + $0x38] sm:$0xff]  ;;  %v1864_v13 = vld [vmem:[%s4451_s5 + $0x30] sm:$0xff]  ;;  %v1862_v46 = vld [vmem:[%s4451_s5 + $0x20] sm:$0xff] }
 0x7c7   :  { %v1288_v45 = vpop.xlane.xlu1 %1287  ;;  %1758 = vbcast.lane.b32.xlu1 %v1756_v20, 256  ;;  %1751 = vbcast.lane.b32.xlu0 %v1749_v34, 256  ;;  %v1798_v20 = vrot.slane %v1743_v12, %v4628_v39  ;;  %v1872_v39 = vld [vmem:[%s4451_s5 + $0x70] sm:$0xff]  ;;  %v1869_v12 = vld [vmem:[%s4451_s5 + $0x58] sm:$0xff] }
 0x7c8   :  { %3153 = vrcp.f32 %v1288_v45 }
 0x7cb   :  { %1765 = vbcast.lane.b32.xlu1 %v1763_v57, 256  ;;  %1779 = vbcast.lane.b32.xlu0 %v1777_v9, 256  ;;  %v1873_v57 = vld [vmem:[%s4451_s5 + $0x78] sm:$0xff]  ;;  %v1866_v9 = vld [vmem:[%s4451_s5 + $0x40] sm:$0xff] }
 0x7cf   :  { %1772 = vbcast.lane.b32.xlu1 %v1770_v4, 256  ;;  %1793 = vbcast.lane.b32.xlu0 %v1791_v17, 256  ;;  %v4630_v4 = vld [vmem:[#allocation29_spill] sm:$0xff]  ;;  %v1863_v17 = vld [vmem:[%s4451_s5 + $0x28] sm:$0xff] }
 0x7d3   :  { %1786 = vbcast.lane.b32.xlu1 %v1784_v51, 256  ;;  %v1861_v51 = vld [vmem:[%s4451_s5 + $0x18] sm:$0xff] }
 0x7d5   :  { %v3154_v30 = vpop.eup %3153 }
 0x7d6   :  { %v1290_v34 = vmul.f32 %v3154_v30, %v1288_v45  ;;  %v1868_v45 = vld [vmem:[%s4451_s5 + $0x50] sm:$0xff] }
 0x7d7   :  { %1800 = vbcast.lane.b32.xlu1 %v1798_v20, 256  ;;  %v1859_v20 = vld [vmem:[%s4451_s5 + $0x8] sm:$0xff] }
 0x7d8   :  { %v1291_v14 = vsub.f32 2.0, %v1290_v34  ;;  %v1858_v34 = vld [vmem:[%s4451_s5] sm:$0xff] }
 0x7da   :  { %v1292_v48 = vmul.f32 %v3154_v30, %v1291_v14  ;;  %v1871_v14 = vld [vmem:[%s4451_s5 + $0x68] sm:$0xff]  ;;  %v1860_v30 = vld [vmem:[%s4451_s5 + $0x10] sm:$0xff] }
 0x7dc   :  { %v4198_v27 = vmul.f32 %v3150_v36, %v1292_v48  ;;  %v1870_v36 = vld [vmem:[%s4451_s5 + $0x60] sm:$0xff] }
 0x7de   :  { %4629 = vst [vmem:[#allocation18_spill] sm:$0xff] %v4198_v27  ;;  %2310 = vst [vmem:[%s4457_s12 + $0x8] sm:$0xff] %v4198_v27  ;;  %2939 = vmatmul.mubr.f32.vlgmr.msra.gmra.mxu1 %v4198_v27 }
 0x7df   :  { %2977 = vmatpush3.msra.mxu1 %v1873_v57  ;;  %3008 = vmatprep.mubr.msk.f32.mxu1 %vm3174_vm0, %v4555_v60 }
 0x7e0   :  { %2978 = vmatprep.subr.mxu1 %v4555_v60 }
 0x7e1   :  { %2979 = vmatpush3.msra.mxu1 %v1872_v39 }
 0x7e2   :  { %2980 = vmatprep.subr.mxu1 %v4555_v60 }
 0x7e3   :  { %2981 = vmatpush3.msra.mxu1 %v1871_v14 }
 0x7e4   :  { %2982 = vmatprep.subr.mxu1 %v4555_v60 }
 0x7e5   :  { %2983 = vmatpush3.msra.mxu1 %v1870_v36 }
 0x7e6   :  { %2984 = vmatprep.subr.mxu1 %v4555_v60 }
 0x7e7   :  { %2985 = vmatpush3.msra.mxu1 %v1869_v12 }
 0x7e8   :  { %2986 = vmatprep.subr.mxu1 %v4555_v60 }
 0x7e9   :  { %2987 = vmatpush3.msra.mxu1 %v1868_v45 }
 0x7ea   :  { %2988 = vmatprep.subr.mxu1 %v4555_v60 }
 0x7eb   :  { %2989 = vmatpush3.msra.mxu1 %v1867_v43 }
 0x7ec   :  { %2990 = vmatprep.subr.mxu1 %v4555_v60 }
 0x7ed   :  { %2991 = vmatpush3.msra.mxu1 %v1866_v9 }
 0x7ee   :  { %1508 = vmax.xlane.f32.xlu0 %v4630_v4  ;;  %2992 = vmatprep.subr.mxu1 %v4555_v60 }
 0x7ef   :  { %2993 = vmatpush3.msra.mxu1 %v1865_v3 }
 0x7f0   :  { %2994 = vmatprep.subr.mxu1 %v4555_v60 }
 0x7f1   :  { %2995 = vmatpush3.msra.mxu1 %v1864_v13 }
 0x7f2   :  { %2996 = vmatprep.subr.mxu1 %v4555_v60 }
 0x7f3   :  { %2997 = vmatpush3.msra.mxu1 %v1863_v17 }
 0x7f4   :  { %2998 = vmatprep.subr.mxu1 %v4555_v60 }
 0x7f5   :  { %2999 = vmatpush3.msra.mxu1 %v1862_v46 }
 0x7f6   :  { %3000 = vmatprep.subr.mxu1 %v4555_v60 }
 0x7f7   :  { %3001 = vmatpush3.msra.mxu1 %v1861_v51 }
 0x7f8   :  { %3002 = vmatprep.subr.mxu1 %v4555_v60 }
 0x7f9   :  { %3003 = vmatpush3.msra.mxu1 %v1860_v30 }
 0x7fa   :  { %3004 = vmatprep.subr.mxu1 %v4555_v60 }
 0x7fb   :  { %1526 = vmax.xlane.f32.xlu1 %v4198_v27  ;;  %3005 = vmatpush3.msra.mxu1 %v1859_v20 }
 0x7fc   :  { %3006 = vmatprep.subr.mxu1 %v4555_v60 }
 0x7fd   :  { %3007 = vmatpush3.msra.mxu1 %v1858_v34 }
 0x7fe   :  { %3046 = vmatprep.subr.mxu1 %v4555_v60 }
 0x839   :  { %v1759_v48 = vpop.permute.xlu1 %1758  ;;  %v1752_v57 = vpop.permute.xlu0 %1751 }
 0x83a   :  { %v1803_v39 = vmul.f32 %v3984_v55, %v1759_v48  ;;  %v1802_v14 = vmul.f32 %v3978_v52, %v1752_v57 }
 0x83c   :  { %v1816_v36 = vrot.slane %v1803_v39, 4  ;;  %v1810_v12 = vrot.slane %v1802_v14, 4 }
 0x83d   :  { %v1766_v45 = vpop.permute.xlu1 %1765  ;;  %v1780_v43 = vpop.permute.xlu0 %1779 }
 0x83e   :  { %v1817_v9 = vadd.f32 %v1816_v36, %v1803_v39  ;;  %v1811_v3 = vadd.f32 %v1810_v12, %v1802_v14  ;;  %v1804_v4 = vmul.f32 %v3990_v63, %v1766_v45  ;;  %v1806_v13 = vmul.f32 %v4014_v2, %v1780_v43 }
 0x840   :  { %v1818_v17 = vrot.slane %v1817_v9, 2  ;;  %v1812_v46 = vrot.slane %v1811_v3, 2  ;;  %v1822_v51 = vrot.slane %v1804_v4, 4  ;;  %v1834_v30 = vrot.slane %v1806_v13, 4 }
 0x841   :  { %v1773_v20 = vpop.permute.xlu1 %1772  ;;  %v1794_v34 = vpop.permute.xlu0 %1793 }
 0x842   :  { %v1819_v25 = vadd.f32 %v1818_v17, %v1817_v9  ;;  %v1823_v55 = vadd.f32 %v1822_v51, %v1804_v4  ;;  %v1835_v48 = vadd.f32 %v1834_v30, %v1806_v13  ;;  %v1813_v52 = vadd.f32 %v1812_v46, %v1811_v3 }
 0x843   :  { %v1805_v57 = vmul.f32 %v4002_v18, %v1773_v20  ;;  %v1808_v53 = vmul.f32 %v4020_v8, %v1794_v34 }
 0x844   :  { %v1824_v39 = vrot.slane %v1823_v55, 2  ;;  %v1820_v12 = vrot.slane %v1819_v25, 1  ;;  %v1836_v45 = vrot.slane %v1835_v48, 2  ;;  %v1814_v43 = vrot.slane %v1813_v52, 1 }
 0x845   :  { %v1828_v14 = vrot.slane %v1805_v57, 4  ;;  %v1846_v36 = vrot.slane %v1808_v53, 4  ;;  %v1787_v63 = vpop.permute.xlu1 %1786 }
 0x846   :  { %v1825_v2 = vadd.f32 %v1824_v39, %v1823_v55  ;;  %v1807_v24 = vmul.f32 %v3996_v62, %v1787_v63  ;;  %v1837_v18 = vadd.f32 %v1836_v45, %v1835_v48  ;;  %v1821_v46 = vadd.f32 %v1820_v12, %v1819_v25 }
 0x847   :  { %v1829_v27 = vadd.f32 %v1828_v14, %v1805_v57  ;;  %v1847_v41 = vadd.f32 %v1846_v36, %v1808_v53  ;;  %v1815_v51 = vadd.f32 %v1814_v43, %v1813_v52 }
 0x848   :  { %v1826_v9 = vrot.slane %v1825_v2, 1  ;;  %v1840_v3 = vrot.slane %v1807_v24, 4  ;;  %v1838_v53 = vrot.slane %v1837_v18, 1 }
 0x849   :  { %v1830_v4 = vrot.slane %v1829_v27, 2  ;;  %v1848_v13 = vrot.slane %v1847_v41, 2  ;;  %v1801_v17 = vpop.permute.xlu1 %1800  ;;  %v1889_v62 = vsel %vm398_vm1, %v1821_v46, %v1815_v51  ;;  %v4636_v46 = vld [vmem:[#allocation2_spill] sm:$0xff] }
 0x84a   :  { %v1809_v8 = vmul.f32 %v4008_v6, %v1801_v17  ;;  %v1841_v20 = vadd.f32 %v1840_v3, %v1807_v24  ;;  %v1827_v34 = vadd.f32 %v1826_v9, %v1825_v2 }
 0x84b   :  { %v1831_v30 = vadd.f32 %v1830_v4, %v1829_v27  ;;  %v1849_v59 = vadd.f32 %v1848_v13, %v1847_v41  ;;  %v1839_v27 = vadd.f32 %v1838_v53, %v1837_v18 }
 0x84c   :  { %v1852_v55 = vrot.slane %v1809_v8, 4  ;;  %v1842_v57 = vrot.slane %v1841_v20, 2  ;;  %v1890_v23 = vsel %vm400_vm2, %v1827_v34, %v1889_v62 }
 0x84d   :  { %v1832_v39 = vrot.slane %v1831_v30, 1  ;;  %v1850_v25 = vrot.slane %v1849_v59, 1 }
 0x84e   :  { %v1853_v14 = vadd.f32 %v1852_v55, %v1809_v8  ;;  %v1843_v63 = vadd.f32 %v1842_v57, %v1841_v20 }
 0x84f   :  { %v1833_v36 = vadd.f32 %v1832_v39, %v1831_v30  ;;  %v1851_v45 = vadd.f32 %v1850_v25, %v1849_v59 }
 0x850   :  { %v1854_v48 = vrot.slane %v1853_v14, 2  ;;  %v1844_v52 = vrot.slane %v1843_v63, 1 }
 0x851   :  { %v1891_v6 = vsel %vm402_vm3, %v1833_v36, %v1890_v23 }
 0x852   :  { %v1855_v24 = vadd.f32 %v1854_v48, %v1853_v14  ;;  %v1845_v12 = vadd.f32 %v1844_v52, %v1843_v63  ;;  %v1892_v41 = vsel %vm404_vm4, %v1839_v27, %v1891_v6 }
 0x854   :  { %v1856_v2 = vrot.slane %v1855_v24, 1  ;;  %v1893_v43 = vsel %vm406_vm5, %v1845_v12, %v1892_v41 }
 0x855   :  { %v1894_v4 = vsel %vm408_vm6, %v1851_v45, %v1893_v43 }
 0x856   :  { %v1857_v9 = vadd.f32 %v1856_v2, %v1855_v24  ;;  %v4380_v24 = vld [vmem:[%s4456_s2] sm:$0xff] }
 0x857   :  { %vm1556_vm2 = vcmp.gt.f32.partialorder %v4380_v24, 0.9 }
 0x858   :  { %v1895_v13 = vsel %vm410_vm7, %v1857_v9, %v1894_v4  ;;  %v2313_v41 = vsel %vm1556_vm2, 1.0, %v4555_v60 }
 0x859   :  { %3009 = vmatmul.mubr.f32.vlgmr.msra.gmra.mxu1 %v1895_v13 }
 0x85a   :  { %3047 = vmatpush3.msra.mxu1 %v3656_v61  ;;  %3078 = vmatprep.mubr.msk.f32.mxu1 %vm3174_vm0, %v4555_v60 }
 0x85b   :  { %3048 = vmatprep.subr.mxu1 %v4555_v60 }
 0x85c   :  { %3049 = vmatpush3.msra.mxu1 %v3660_v50 }
 0x85d   :  { %3050 = vmatprep.subr.mxu1 %v4555_v60 }
 0x85e   :  { %3051 = vmatpush3.msra.mxu1 %v3676_v58 }
 0x85f   :  { %3052 = vmatprep.subr.mxu1 %v4555_v60 }
 0x860   :  { %3053 = vmatpush3.msra.mxu1 %v3680_v1  ;;  %v3171_v1 = vld [vmem:[%s4457_s12] sm:$0xff] }
 0x861   :  { %3054 = vmatprep.subr.mxu1 %v4555_v60 }
 0x862   :  { %3055 = vmatpush3.msra.mxu1 %v3698_v44 }
 0x863   :  { %3056 = vmatprep.subr.mxu1 %v4555_v60 }
 0x864   :  { %3057 = vmatpush3.msra.mxu1 %v3706_v49  ;;  %v2316_v49 = vld [vmem:[%s4453_s6] ss:$0 sm:$0xff]  ;;  %s3178_s6 = smov 32  }
 0x865   :  { %3058 = vmatprep.subr.mxu1 %v4555_v60 }
 0x866   :  { %3059 = vmatpush3.msra.mxu1 %v3720_v11  ;;  %v4634_v11 = vld [vmem:[#allocation3_spill] sm:$0xff] }
 0x867   :  { %3060 = vmatprep.subr.mxu1 %v4555_v60  ;;  %vm242_vm15 = vcmp.lt.s32.totalorder %v4634_v11, 3 }
 0x868   :  { %3061 = vmatpush3.msra.mxu1 %v3728_v19 }
 0x869   :  { %3062 = vmatprep.subr.mxu1 %v4555_v60 }
 0x86a   :  { %3063 = vmatpush3.msra.mxu1 %v3742_v42  ;;  %v4635_v42 = vld [vmem:[#allocation18_spill] sm:$0xff] }
 0x86b   :  { %3064 = vmatprep.subr.mxu1 %v4555_v60 }
 0x86c   :  { %3065 = vmatpush3.msra.mxu1 %v3750_v56 }
 0x86d   :  { %3066 = vmatprep.subr.mxu1 %v4555_v60 }
 0x86e   :  { %3067 = vmatpush3.msra.mxu1 %v3764_v31 }
 0x86f   :  { %3068 = vmatprep.subr.mxu1 %v4555_v60 }
 0x870   :  { %3069 = vmatpush3.msra.mxu1 %v3772_v33 }
 0x871   :  { %3070 = vmatprep.subr.mxu1 %v4555_v60 }
 0x872   :  { %3071 = vmatpush3.msra.mxu1 %v3786_v38 }
 0x873   :  { %3072 = vmatprep.subr.mxu1 %v4555_v60 }
 0x874   :  { %3073 = vmatpush3.msra.mxu1 %v3794_v26 }
 0x875   :  { %3074 = vmatprep.subr.mxu1 %v4555_v60 }
 0x876   :  { %3075 = vmatpush3.msra.mxu1 %v3808_v5 }
 0x877   :  { %3076 = vmatprep.subr.mxu1 %v4555_v60 }
 0x878   :  { %3077 = vmatpush3.msra.mxu1 %v3816_v28 }
 0x884   :  { %v1527_v44 = vpop.xlane.xlu1 %1526 }
 0x885   :  { %vm1528_vm12 = vcmp.ge.f32.partialorder %v4635_v42, %v1527_v44  ;;  %v4641_v44 = vld [vmem:[#allocation12_spill] sm:$0xff]  ;;  %v4644_v42 = vld [vmem:[#allocation15_spill] sm:$0xff] }
 0x886   :  { %v1529_v26 = vsel %vm1528_vm12, %v4634_v11, 128 }
 0x89e   :  { %v1432_v61 = vpop.f32.mrf.mxu1 }
 0x89f   :  { %v1436_v50 = vmul.f32 %v1432_v61, %v4184_v15  ;;  %v1530_v15 = vand.u32 65535, %v1529_v26 }
 0x8a0   :  { %v2940_v58 = vpop.f32.mrf.mxu1 }
 0x8a1   :  { %2974 = vmatmul.mubr.f32.vlgmr.msra.gmra.mxu0 %v1436_v50  ;;  %v1532_v18 = vcvt.s32.f32 %v1530_v15 }
 0x8a2   :  { %3012 = vmatpush3.msra.mxu0 %v3654_v37  ;;  %3043 = vmatprep.mubr.msk.f32.mxu0 %vm3174_vm0, %v4555_v60  ;;  %v4631_v37 = vld [vmem:[#allocation26_spill] sm:$0xff] }
 0x8a3   :  { %3013 = vmatprep.subr.mxu0 %v4555_v60 }
 0x8a4   :  { %3014 = vmatpush3.msra.mxu0 %v3658_v0  ;;  %v4632_v0 = vld [vmem:[#allocation27_spill] sm:$0xff] }
 0x8a5   :  { %3015 = vmatprep.subr.mxu0 %v4555_v60 }
 0x8a6   :  { %3016 = vmatpush3.msra.mxu0 %v3674_v22  ;;  %v4633_v22 = vld [vmem:[#allocation28_spill] sm:$0xff] }
 0x8a7   :  { %3017 = vmatprep.subr.mxu0 %v4555_v60 }
 0x8a8   :  { %3018 = vmatpush3.msra.mxu0 %v3678_v40  ;;  %v1509_v40 = vpop.xlane.xlu0 %1508 }
 0x8a9   :  { %3019 = vmatprep.subr.mxu0 %v4555_v60  ;;  %vm1510_vm11 = vcmp.ge.f32.partialorder %v3171_v1, %v1509_v40  ;;  %v4639_v40 = vld [vmem:[#allocation32_spill] sm:$0xff]  ;;  %v4640_v1 = vld [vmem:[#allocation33_spill] sm:$0xff] }
 0x8aa   :  { %3020 = vmatpush3.msra.mxu0 %v4590_v10  ;;  %v1511_v19 = vsel %vm1510_vm11, %v4634_v11, 128  ;;  %v1531_v10 = vshra.s32 %v1529_v26, 16  ;;  %v4649_v26 = vld [vmem:[#allocation38_spill] sm:$0xff] }
 0x8ab   :  { %3021 = vmatprep.subr.mxu0 %v4555_v60  ;;  %v1513_v38 = vshra.s32 %v1511_v19, 16 }
 0x8ac   :  { %3022 = vmatpush3.msra.mxu0 %v4591_v47  ;;  %v1533_v47 = vcvt.s32.f32 %v1531_v10  ;;  %v4652_v10 = vld [vmem:[#allocation41_spill] sm:$0xff] }
 0x8ad   :  { %3023 = vmatprep.subr.mxu0 %v4555_v60  ;;  %v1515_v28 = vcvt.s32.f32 %v1513_v38  ;;  %v4648_v38 = vld [vmem:[#allocation37_spill] sm:$0xff] }
 0x8ae   :  { %3024 = vmatpush3.msra.mxu0 %v4592_v7 }
 0x8af   :  { %3025 = vmatprep.subr.mxu0 %v4555_v60 }
 0x8b0   :  { %3026 = vmatpush3.msra.mxu0 %v4593_v21 }
 0x8b1   :  { %3027 = vmatprep.subr.mxu0 %v4555_v60 }
 0x8b2   :  { %3028 = vmatpush3.msra.mxu0 %v4594_v16  ;;  %v1512_v16 = vand.u32 65535, %v1511_v19  ;;  %v4643_v19 = vld [vmem:[#allocation14_spill] sm:$0xff] }
 0x8b3   :  { %3029 = vmatprep.subr.mxu0 %v4555_v60 }
 0x8b4   :  { %3030 = vmatpush3.msra.mxu0 %v4595_v32  ;;  %v1514_v23 = vcvt.s32.f32 %v1512_v16 }
 0x8b5   :  { %3031 = vmatprep.subr.mxu0 %v4555_v60 }
 0x8b6   :  { %3032 = vmatpush3.msra.mxu0 %v4596_v35 }
 0x8b7   :  { %3033 = vmatprep.subr.mxu0 %v4555_v60 }
 0x8b8   :  { %3034 = vmatpush3.msra.mxu0 %v4597_v29 }
 0x8b9   :  { %3035 = vmatprep.subr.mxu0 %v4555_v60 }
 0x8ba   :  { %3036 = vmatpush3.msra.mxu0 %v4598_v54 }
 0x8bb   :  { %3037 = vmatprep.subr.mxu0 %v4555_v60 }
 0x8bc   :  { %3038 = vmatpush3.msra.mxu0 %v4631_v37 }
 0x8bd   :  { %3039 = vmatprep.subr.mxu0 %v4555_v60 }
 0x8be   :  { %3040 = vmatpush3.msra.mxu0 %v4632_v0  ;;  %v4637_v0 = vld [vmem:[#allocation30_spill] sm:$0xff] }
 0x8bf   :  { %3041 = vmatprep.subr.mxu0 %v4555_v60 }
 0x8c0   :  { %3042 = vmatpush3.msra.mxu0 %v4633_v22  ;;  %v4638_v22 = vld [vmem:[#allocation31_spill] sm:$0xff] }
 0x8c1   :  { %3081 = vmatprep.subr.mxu0 %v4555_v60 }
 0x919   :  { %v1963_v56 = vpop.f32.mrf.mxu1 }
 0x91a   :  { %v1964_v31 = vadd.f32 %v2316_v49, %v1963_v56  ;;  %v4642_v49 = vld [vmem:[#allocation13_spill] sm:$0xff]  ;;  %v4645_v56 = vld [vmem:[#allocation34_spill] sm:$0xff] }
 0x91b   :  { %v3010_v33 = vpop.f32.mrf.mxu1 }
 0x91c   :  { %v1967_v5 = vsel %vm241_vm10, %v1964_v31, -1e+30  ;;  %v4646_v31 = vld [vmem:[#allocation35_spill] sm:$0xff]  ;;  %v4647_v33 = vld [vmem:[#allocation36_spill] sm:$0xff] }
 0x91d   :  { %1968 = vmax.xlane.f32.xlu0 %v1967_v5 }
 0x921   :  { %1516 = vmin.xlane.f32.xlu0 %v1515_v28 }
 0x925   :  { %1534 = vmin.xlane.f32.xlu0 %v1533_v47 }
 0x961   :  { %v1503_v7 = vpop.f32.mrf.mxu0 }
 0x962   :  { %v1507_v61 = vmin.f32 %v1503_v7, 1.0 }
 0x963   :  { %v2975_v21 = vpop.f32.mrf.mxu0 }
 0x9a6   :  { %v1969_v32 = vpop.xlane.xlu0 %1968 }
 0x9a7   :  { %v1970_v35 = vsub.f32 %v1967_v5, %v1969_v32  ;;  %v4650_v5 = vld [vmem:[#allocation39_spill] sm:$0xff] }
 0x9a9   :  { %v1971_v29 = vmul.f32 1.442695, %v1970_v35 }
 0x9aa   :  { %v1517_v54 = vpop.xlane.xlu0 %1516 }
 0x9ab   :  { %3155 = vpow2.f32 %v1971_v29  ;;  %vm1518_vm13 = vcmp.eq.f32.partialorder %v1515_v28, %v1517_v54  ;;  %v1523_v55 = vcvt.f32.s32 %v1517_v54  ;;  %v4651_v28 = vld [vmem:[#allocation40_spill] sm:$0xff] }
 0x9ac   :  { %v1519_v59 = vsel %vm1518_vm13, %v1514_v23, inf }
 0x9ad   :  { %1520 = vmin.xlane.f32.xlu0 %v1519_v59  ;;  %v1524_v14 = vshll.u32 %v1523_v55, 16  ;;  %v3180_v55 = vmov 1  }
 0x9ae   :  { %v1535_v3 = vpop.xlane.xlu0 %1534  ;;  %3126 = vset.pattern.permute.xlu0 %v3180_v55 }
 0x9af   :  { %vm1536_vm14 = vcmp.eq.f32.partialorder %v1533_v47, %v1535_v3  ;;  %v1541_v39 = vcvt.f32.s32 %v1535_v3 }
 0x9b0   :  { %v1537_v8 = vsel %vm1536_vm14, %v1532_v18, inf }
 0x9b1   :  { %v1542_v62 = vshll.u32 %v1541_v39, 16 }
 0x9b8   :  { %v3156_v17 = vpop.eup %3155 }
 0x9b9   :  { %1973 = vadd.xlane.f32.xlu1 %v3156_v17 }
 0x9bd   :  { %1538 = vmin.xlane.f32.xlu1 %v1537_v8 }
 0x9c3   :  { %2232 = vrot.lane.b32.xlu0 %v4636_v46, %s3178_s6 }
 0xa36   :  { %v1521_v51 = vpop.xlane.xlu0 %1520 }
 0xa37   :  { %v1522_v57 = vcvt.f32.s32 %v1521_v51 }
 0xa39   :  { %v1525_v63 = vadd.s32 %v1524_v14, %v1522_v57 }
 0xa3a   :  { %v2233_v30 = vpop.permute.xlu0 %2232 }
 0xa3b   :  { %v4369_v20 = vsel %vm242_vm15, %v2233_v30, -1e+30 }
 0xa3c   :  { %2235 = vmax.xlane.f32.xlu1 %v4369_v20 }
 0xa42   :  { %v1974_v34 = vpop.xlane.xlu1 %1973 }
 0xa43   :  { %3157 = vrcp.f32 %v1974_v34 }
 0xa46   :  { %v1539_v53 = vpop.xlane.xlu1 %1538 }
 0xa47   :  { %v1540_v36 = vcvt.f32.s32 %v1539_v53 }
 0xa49   :  { %v4372_v48 = vadd.s32 %v1542_v62, %v1540_v36 }
 0xa4b   :  { %v1544_v6 = vsub.s32 %v1525_v63, %v4372_v48  ;;  %vm1549_vm1 = vcmp.lt.s32.totalorder %v1525_v63, %v4372_v48 }
 0xa4c   :  { %v1550_v25 = vsel %vm1549_vm1, %v1525_v63, %v4372_v48 }
 0xa4d   :  { %v1546_v52 = vsub.s32 0, %v1544_v6  ;;  %v1551_v27 = vand.u32 1, %v1550_v25 }
 0xa4f   :  { %v2311_v12 = vmin.u32 %v1546_v52, %v1544_v6  ;;  %vm1552_vm4 = vcmp.eq.s32.totalorder %v1551_v27, 0  ;;  %v3181_v27 = vmov 2  }
 0xa50   :  { %v3158_v2 = vpop.eup %3157 }
 0xa51   :  { %v1976_v45 = vmul.f32 %v3158_v2, %v1974_v34  ;;  %vm1548_vm3 = vcmp.eq.s32.totalorder %v2311_v12, 1  ;;  %v3179_v34 = vmov 0  }
 0xa52   :  { %vm1553_vm5 = vmand %vm1548_vm3, %vm1552_vm4  ;;  %3125 = vset.pattern.permute.xlu1 %v3179_v34 }
 0xa53   :  { %v1977_v43 = vsub.f32 2.0, %v1976_v45  ;;  %v2312_v9 = vsel %vm1553_vm5, 1.0, %v4555_v60 }
 0xa54   :  { %v1559_v4 = vmul.f32 %v2313_v41, %v2312_v9 }
 0xa55   :  { %v1978_v13 = vmul.f32 %v3158_v2, %v1977_v43 }
 0xa56   :  { %v1560_v50 = vsub.f32 1.0, %v1559_v4 }
 0xa57   :  { %v1979_v58 = vmul.f32 %v3156_v17, %v1978_v13 }
 0xa58   :  { %v4385_v37 = vmul.f32 %v1560_v50, %v1507_v61 }
 0xa59   :  { %2317 = vst [vmem:[%s4457_s12 + $0x10] sm:$0xff] %v1979_v58  ;;  %3079 = vmatmul.mubr.f32.vlgmr.msra.gmra.mxu1 %v1979_v58 }
 0xa5a   :  { %3044 = vmatmul.mubr.f32.vlgmr.msra.gmra.mxu0 %v4385_v37  ;;  %2314 = vst [vmem:[%s4459_s13 + $0x8] sm:$0xff] %v4385_v37 }
 0xa5b   :  { %3082 = vmatpush3.msra.mxu0 %v4637_v0  ;;  %3113 = vmatprep.mubr.msk.f32.mxu0 %vm3174_vm0, %v4555_v60 }
 0xa5c   :  { %3083 = vmatprep.subr.mxu0 %v4555_v60 }
 0xa5d   :  { %3084 = vmatpush3.msra.mxu0 %v4638_v22 }
 0xa5e   :  { %3085 = vmatprep.subr.mxu0 %v4555_v60 }
 0xa5f   :  { %3086 = vmatpush3.msra.mxu0 %v4639_v40  ;;  %v4653_v40 = vld [vmem:[#allocation17_spill] sm:$0xff] }
 0xa60   :  { %3087 = vmatprep.subr.mxu0 %v4555_v60  ;;  %vm2224_vm10 = vcmp.gt.f32.partialorder %v4653_v40, 0.9 }
 0xa61   :  { %3088 = vmatpush3.msra.mxu0 %v4640_v1 }
 0xa62   :  { %3089 = vmatprep.subr.mxu0 %v4555_v60 }
 0xa63   :  { %3090 = vmatpush3.msra.mxu0 %v4641_v44  ;;  %v2320_v44 = vsel %vm2224_vm10, 1.0, %v4555_v60 }
 0xa64   :  { %3091 = vmatprep.subr.mxu0 %v4555_v60 }
 0xa65   :  { %3092 = vmatpush3.msra.mxu0 %v4642_v49 }
 0xa66   :  { %3093 = vmatprep.subr.mxu0 %v4555_v60 }
 0xa67   :  { %3094 = vmatpush3.msra.mxu0 %v4643_v19 }
 0xa68   :  { %3095 = vmatprep.subr.mxu0 %v4555_v60 }
 0xa69   :  { %3096 = vmatpush3.msra.mxu0 %v4644_v42 }
 0xa6a   :  { %3097 = vmatprep.subr.mxu0 %v4555_v60 }
 0xa6b   :  { %3098 = vmatpush3.msra.mxu0 %v4645_v56 }
 0xa6c   :  { %3099 = vmatprep.subr.mxu0 %v4555_v60 }
 0xa6d   :  { %3100 = vmatpush3.msra.mxu0 %v4646_v31 }
 0xa6e   :  { %3101 = vmatprep.subr.mxu0 %v4555_v60 }
 0xa6f   :  { %3102 = vmatpush3.msra.mxu0 %v4647_v33 }
 0xa70   :  { %3103 = vmatprep.subr.mxu0 %v4555_v60 }
 0xa71   :  { %3104 = vmatpush3.msra.mxu0 %v4648_v38 }
 0xa72   :  { %3105 = vmatprep.subr.mxu0 %v4555_v60 }
 0xa73   :  { %3106 = vmatpush3.msra.mxu0 %v4649_v26 }
 0xa74   :  { %3107 = vmatprep.subr.mxu0 %v4555_v60 }
 0xa75   :  { %3108 = vmatpush3.msra.mxu0 %v4650_v5 }
 0xa76   :  { %3109 = vmatprep.subr.mxu0 %v4555_v60 }
 0xa77   :  { %3110 = vmatpush3.msra.mxu0 %v4651_v28 }
 0xa78   :  { %3111 = vmatprep.subr.mxu0 %v4555_v60 }
 0xa79   :  { %3112 = vmatpush3.msra.mxu0 %v4652_v10 }
 0xac5   :  { %v2236_v47 = vpop.xlane.xlu1 %2235 }
 0xac6   :  { %v2237_v7 = vsub.f32 %v4369_v20, %v2236_v47 }
 0xac8   :  { %v2238_v21 = vmul.f32 1.442695, %v2237_v7 }
 0xaca   :  { %3159 = vpow2.f32 %v2238_v21 }
 0xad7   :  { %v3160_v16 = vpop.eup %3159 }
 0xad8   :  { %2240 = vadd.xlane.f32.xlu1 %v3160_v16 }
 0xadc   :  { %2194 = vmax.xlane.f32.xlu1 %v1979_v58 }
 0xb19   :  { %v2118_v32 = vpop.f32.mrf.mxu1 }
 0xb1a   :  { %v2048_v35 = vpop.f32.mrf.mxu0 }
 0xb1b   :  { %v2122_v29 = vmul.f32 %v2118_v32, %v2048_v35  ;;  %v3080_v54 = vpop.f32.mrf.mxu1 }
 0xb1c   :  { %v3045_v23 = vpop.f32.mrf.mxu0 }
 0xb1d   :  { %3114 = vmatmul.mubr.f32.vlgmr.msra.gmra.mxu0 %v2122_v29 }
 0xb61   :  { %v2241_v59 = vpop.xlane.xlu1 %2240 }
 0xb62   :  { %3161 = vrcp.f32 %v2241_v59 }
 0xb65   :  { %v2195_v15 = vpop.xlane.xlu1 %2194 }
 0xb66   :  { %vm2196_vm0 = vcmp.ge.f32.partialorder %v1979_v58, %v2195_v15 }
 0xb67   :  { %v2197_v8 = vsel %vm2196_vm0, %v4634_v11, 128 }
 0xb68   :  { %v2199_v30 = vshra.s32 %v2197_v8, 16  ;;  %v2198_v53 = vand.u32 65535, %v2197_v8 }
 0xb6a   :  { %v2201_v20 = vcvt.s32.f32 %v2199_v30  ;;  %v2200_v6 = vcvt.s32.f32 %v2198_v53 }
 0xb6f   :  { %v3162_v3 = vpop.eup %3161 }
 0xb70   :  { %v2243_v17 = vmul.f32 %v3162_v3, %v2241_v59 }
 0xb72   :  { %v2244_v18 = vsub.f32 2.0, %v2243_v17 }
 0xb74   :  { %v2245_v46 = vmul.f32 %v3162_v3, %v2244_v18 }
 0xb76   :  { %v2246_v51 = vmul.f32 %v3160_v16, %v2245_v46 }
 0xb78   :  { %2265 = vmax.xlane.f32.xlu1 %v2246_v51 }
 0xb7c   :  { %2202 = vmin.xlane.f32.xlu1 %v2201_v20 }
 0xbdd   :  { %v2189_v39 = vpop.f32.mrf.mxu0 }
 0xbde   :  { %v2193_v19 = vmin.f32 %v2189_v39, 1.0 }
 0xbdf   :  { %v3115_v57 = vpop.f32.mrf.mxu0 }
 0xc01   :  { %v2266_v14 = vpop.xlane.xlu1 %2265 }
 0xc02   :  { %vm2267_vm6 = vcmp.ge.f32.partialorder %v2246_v51, %v2266_v14 }
 0xc03   :  { %v2268_v62 = vsel %vm2267_vm6, %v4634_v11, 128 }
 0xc04   :  { %v2270_v36 = vshra.s32 %v2268_v62, 16  ;;  %v2269_v12 = vand.u32 65535, %v2268_v62 }
 0xc05   :  { %v2203_v63 = vpop.xlane.xlu1 %2202 }
 0xc06   :  { %v2272_v25 = vcvt.s32.f32 %v2270_v36  ;;  %vm2204_vm7 = vcmp.eq.f32.partialorder %v2201_v20, %v2203_v63  ;;  %v2209_v2 = vcvt.f32.s32 %v2203_v63  ;;  %v2271_v43 = vcvt.s32.f32 %v2269_v12 }
 0xc07   :  { %v2205_v52 = vsel %vm2204_vm7, %v2200_v6, inf }
 0xc08   :  { %2273 = vmin.xlane.f32.xlu1 %v2272_v25  ;;  %2206 = vmin.xlane.f32.xlu0 %v2205_v52  ;;  %v2210_v9 = vshll.u32 %v2209_v2, 16 }
 0xc19   :  { %2249 = vperm.xlu1 %3125, %v2246_v51  }
 0xc1d   :  { %3127 = vset.pattern.permute.xlu1 %v3181_v27 }
 0xc1e   :  { %2254 = vperm.xlu0 %3126, %v2246_v51  }
 0xc22   :  { %3128 = vset.pattern.permute.xlu0 %v3181_v27 }
 0xc91   :  { %v2207_v41 = vpop.xlane.xlu0 %2206  ;;  %v2274_v45 = vpop.xlane.xlu1 %2273 }
 0xc92   :  { %v2208_v11 = vcvt.f32.s32 %v2207_v41  ;;  %vm2275_vm8 = vcmp.eq.f32.partialorder %v2272_v25, %v2274_v45  ;;  %v2280_v31 = vcvt.f32.s32 %v2274_v45 }
 0xc93   :  { %v2276_v4 = vsel %vm2275_vm8, %v2271_v43, inf }
 0xc94   :  { %v2211_v13 = vadd.s32 %v2210_v9, %v2208_v11  ;;  %2277 = vmin.xlane.f32.xlu1 %v2276_v4  ;;  %v2281_v26 = vshll.u32 %v2280_v31, 16 }
 0xc96   :  { %v2212_v61 = vsub.s32 %v4372_v48, %v2211_v13  ;;  %vm2217_vm9 = vcmp.lt.s32.totalorder %v4372_v48, %v2211_v13 }
 0xc97   :  { %v2218_v50 = vsel %vm2217_vm9, %v4372_v48, %v2211_v13  ;;  %v2250_v48 = vpop.permute.xlu1 %2249 }
 0xc98   :  { %v2214_v58 = vsub.s32 0, %v2212_v61  ;;  %v2219_v0 = vand.u32 1, %v2218_v50  ;;  %v2252_v7 = vmul.f32 %v2250_v48, %v4653_v40 }
 0xc99   :  { %v2255_v33 = vpop.permute.xlu0 %2254 }
 0xc9a   :  { %v2318_v22 = vmin.u32 %v2214_v58, %v2212_v61  ;;  %vm2220_vm11 = vcmp.eq.s32.totalorder %v2219_v0, 0  ;;  %v2257_v28 = vmul.f32 %v2255_v33, %v4385_v37 }
 0xc9c   :  { %vm2216_vm12 = vcmp.eq.s32.totalorder %v2318_v22, 1  ;;  %v2258_v32 = vadd.f32 %v2257_v28, %v2252_v7 }
 0xc9d   :  { %vm2221_vm13 = vmand %vm2216_vm12, %vm2220_vm11 }
 0xc9e   :  { %v2319_v1 = vsel %vm2221_vm13, 1.0, %v4555_v60 }
 0xc9f   :  { %v2227_v49 = vmul.f32 %v2320_v44, %v2319_v1 }
 0xca1   :  { %v2228_v42 = vsub.f32 1.0, %v2227_v49 }
 0xca3   :  { %v2229_v56 = vmul.f32 %v2228_v42, %v2193_v19 }
 0xca5   :  { %2260 = vperm.xlu1 %3127, %v2246_v51   ;;  %2321 = vst [vmem:[%s4459_s13 + $0x10] sm:$0xff] %v2229_v56 }
 0xd1d   :  { %v2278_v38 = vpop.xlane.xlu1 %2277 }
 0xd1e   :  { %v2279_v5 = vcvt.f32.s32 %v2278_v38 }
 0xd20   :  { %v2282_v10 = vadd.s32 %v2281_v26, %v2279_v5 }
 0xd21   :  { %v2261_v47 = vpop.permute.xlu1 %2260 }
 0xd22   :  { %vm2283_vm14 = vcmp.eq.s32.totalorder %v2282_v10, 1  ;;  %v2263_v21 = vmul.f32 %v2261_v47, %v2229_v56 }
 0xd23   :  { %v2322_v16 = vsel %vm2283_vm14, 1.0, %v4555_v60 }
 0xd24   :  { %v2286_v35 = vmul.f32 %v4380_v24, %v2322_v16  ;;  %v2264_v54 = vadd.f32 %v2263_v21, %v2258_v32 }
 0xd26   :  { %v2287_v29 = vsub.f32 1.0, %v2286_v35 }
 0xd28   :  { %v2288_v23 = vmul.f32 %v2287_v29, %v2264_v54 }
 0xd2a   :  { %2289 = vst [vmem:[%s4460_s10] sm:$0xff] %v2288_v23 }

</bundles_post_ra>
